<compile_context>
chip_gen: v5e
topology: v5e:2x2
jax: 0.10.0
libtpu: 0.0.40
codegen_flags: <defaults>
</compile_context>

<pallas_src>
import functools

import numpy as np
import jax
import jax.numpy as jnp
from jax import lax
from jax.experimental import pallas as pl
from jax.experimental.pallas import tpu as pltpu

_MASK_VALUE = -1e30              # large finite negative (NaN-safe vs -inf)


@functools.lru_cache(maxsize=None)
def _vmem_limit_bytes():
    """Generation-aware VMEM budget (~100 MiB on v5e/v6e, ~48 MiB on v7x)."""
    cap = 128 * 1024 * 1024
    try:
        cap = int(getattr(pltpu.get_tpu_info(), "vmem_capacity_bytes", cap))
    except Exception:
        pass
    return int(min(100 * 1024 * 1024, max(32 * 1024 * 1024, cap - 16 * 1024 * 1024)))


def _sublane_multiple(dtype):
    return {4: 8, 2: 16, 1: 32}.get(jnp.dtype(dtype).itemsize, 8)


def _pick_tile(dim, cap, multiple):
    """Largest divisor of `dim` <= cap that is a multiple of `multiple`;
    falls back to the full dim (a full-extent block is always legal)."""
    if dim <= cap:
        return dim
    t = (cap // multiple) * multiple
    while t >= multiple:
        if dim % t == 0:
            return t
        t -= multiple
    return dim


# ----------------------------------------------------------------------------
# Fused QKV projection + RoPE kernel (writes q/k/v head-major [B, NH, S, D])
# ----------------------------------------------------------------------------
def qkv_rope_kernel(x_ref, wq_ref, wk_ref, wv_ref, bq_ref, bk_ref, bv_ref,
                    cos_ref, sin_ref, q_out, k_out, v_out,
                    acc_q, acc_k, acc_v, *, num_heads, use_rope):
    kk = pl.program_id(2)

    @pl.when(kk == 0)
    def _init():
        acc_q[...] = jnp.zeros_like(acc_q)
        acc_k[...] = jnp.zeros_like(acc_k)
        acc_v[...] = jnp.zeros_like(acc_v)

    x = x_ref[0]                                   # [ts, tkh], read once for 3 dots
    acc_q[...] += jnp.dot(x, wq_ref[...], preferred_element_type=jnp.float32)
    acc_k[...] += jnp.dot(x, wk_ref[...], preferred_element_type=jnp.float32)
    acc_v[...] += jnp.dot(x, wv_ref[...], preferred_element_type=jnp.float32)

    @pl.when(kk == pl.num_programs(2) - 1)
    def _finalize():
        q = acc_q[...] + bq_ref[...]
        k = acc_k[...] + bk_ref[...]
        v = acc_v[...] + bv_ref[...]
        ts, hidden = q.shape
        head_dim = hidden // num_heads
        if use_rope:
            # Per-head [ts, D] tables broadcast across heads (num_heads x less
            # HBM/VMEM table traffic than a full [S, H] table).
            cos = jnp.concatenate([cos_ref[...]] * num_heads, axis=-1)
            sin = jnp.concatenate([sin_ref[...]] * num_heads, axis=-1)
            lane = lax.broadcasted_iota(jnp.int32, q.shape, 1)
            is_even = (lane % 2) == 0

            def rope(t):
                # Even/odd pair swap via XLU rolls + VPU select: no [H,H]
                # permutation matmul, no extra MXU work.  Wrap-around lanes
                # are multiplied by sin == 0 (pass-through positions).
                nxt = pltpu.roll(t, shift=hidden - 1, axis=1)   # out[i] = t[i+1]
                prv = pltpu.roll(t, shift=1, axis=1)            # out[i] = t[i-1]
                return t * cos + jnp.where(is_even, nxt, prv) * sin

            q = rope(q)
            k = rope(k)

        def split_heads(t, out):
            # [ts, H] -> [NH, ts, D] so the attention kernel gets head-major
            # blocks and needs zero in-loop relayouts.
            out[0] = jnp.transpose(t.reshape(ts, num_heads, head_dim),
                                   (1, 0, 2)).astype(out.dtype)

        split_heads(q, q_out)
        split_heads(k, k_out)
        split_heads(v, v_out)


def qkv_proj_rope(x, wq, wk, wv, bq, bk, bv, cos, sin, *, num_heads, use_rope):
    B, S, H = x.shape
    D = H // num_heads
    item = x.dtype.itemsize
    sub = _sublane_multiple(x.dtype)
    vmem = _vmem_limit_bytes()

    # Keep all three weight matrices VMEM-resident (DMA'd once for the whole
    # grid) when they fit; otherwise sweep K in 128-multiples sized to budget.
    w_bytes_per_row = 6 * H * item               # 3 weights x double buffer
    if w_bytes_per_row * H <= vmem // 2:
        tkh = H
    else:
        tkh_cap = max(128, ((vmem // 2) // w_bytes_per_row) // 128 * 128)
        tkh = _pick_tile(H, tkh_cap, 128)

    per_ts = 6 * H * item + 12 * H + 2 * tkh * item + 16 * max(D, 1)
    rem = max(vmem - w_bytes_per_row * tkh, vmem // 4)
    ts_cap = max(sub, int(0.8 * rem) // per_ts)
    ts = _pick_tile(S, min(512, ts_cap), sub)

    grid = (B, S // ts, H // tkh)
    kernel = functools.partial(qkv_rope_kernel, num_heads=num_heads,
                               use_rope=use_rope)
    out_sds = jax.ShapeDtypeStruct((B, num_heads, S, D), x.dtype)
    w_spec = pl.BlockSpec((tkh, H), lambda b, i, k: (k, 0))
    b_spec = pl.BlockSpec((1, H), lambda b, i, k: (0, 0))
    cs_spec = pl.BlockSpec((ts, D), lambda b, i, k: (i, 0))
    o_spec = pl.BlockSpec((1, num_heads, ts, D), lambda b, i, k: (b, 0, i, 0))

    return pl.pallas_call(
        kernel,
        out_shape=(out_sds, out_sds, out_sds),
        grid=grid,
        in_specs=[
            pl.BlockSpec((1, ts, tkh), lambda b, i, k: (b, i, k)),
            w_spec, w_spec, w_spec,
            b_spec, b_spec, b_spec,
            cs_spec, cs_spec,
        ],
        out_specs=(o_spec, o_spec, o_spec),
        scratch_shapes=[
            pltpu.VMEM((ts, H), jnp.float32),
            pltpu.VMEM((ts, H), jnp.float32),
            pltpu.VMEM((ts, H), jnp.float32),
        ],
        compiler_params=pltpu.CompilerParams(
            dimension_semantics=("parallel", "parallel", "arbitrary"),
            vmem_limit_bytes=vmem,
        ),
    )(x, wq, wk, wv, bq.reshape(1, H), bk.reshape(1, H), bv.reshape(1, H),
      cos, sin)


# ----------------------------------------------------------------------------
# Flash-style causal attention (batched over heads, online softmax)
# ----------------------------------------------------------------------------
def flash_attn_kernel(q_ref, k_ref, v_ref, o_ref, m_ref, l_ref, acc_ref, *,
                      tq, tk):
    iq = pl.program_id(1)
    ik = pl.program_id(2)

    @pl.when(ik == 0)
    def _init():
        m_ref[...] = jnp.full_like(m_ref, _MASK_VALUE)
        l_ref[...] = jnp.zeros_like(l_ref)
        acc_ref[...] = jnp.zeros_like(acc_ref)

    # Skip compute for KV blocks entirely above the causal diagonal (their
    # DMA is also elided by the clamped kv index_map in the wrapper).
    @pl.when(ik * tk < (iq + 1) * tq)
    def _compute():
        q = q_ref[0]                               # [NH, tq, D] (native dtype -> MXU)
        k = k_ref[0]                               # [NH, tk, D]
        v = v_ref[0]                               # [NH, tk, D]
        # Softmax scale was folded into Wq/bq -> no per-score multiply here.
        s = jnp.einsum("nqd,nkd->nqk", q, k,
                       preferred_element_type=jnp.float32)
        row = iq * tq + lax.broadcasted_iota(jnp.int32, (tq, tk), 0)
        col = ik * tk + lax.broadcasted_iota(jnp.int32, (tq, tk), 1)
        s = jnp.where((col <= row)[None], s, _MASK_VALUE)
        m_prev = m_ref[...]                        # [NH, tq, 1]
        m_new = jnp.maximum(m_prev, jnp.max(s, axis=-1, keepdims=True))
        alpha = jnp.exp(m_prev - m_new)
        p = jnp.exp(s - m_new)
        l_ref[...] = alpha * l_ref[...] + jnp.sum(p, axis=-1, keepdims=True)
        acc_ref[...] = alpha * acc_ref[...] + jnp.einsum(
            "nqk,nkd->nqd", p.astype(v.dtype), v,
            preferred_element_type=jnp.float32)
        m_ref[...] = m_new

    @pl.when(ik == pl.num_programs(2) - 1)
    def _finalize():
        nh, tq_, d = acc_ref.shape
        o = acc_ref[...] / l_ref[...]              # exact normalization
        # Single lane-dense [tq, H] slab store (no per-head concatenation).
        o_ref[0] = jnp.transpose(o, (1, 0, 2)).reshape(tq_, nh * d).astype(o_ref.dtype)


def flash_attention(q, k, v):
    B, NH, S, D = q.shape
    H = NH * D
    item = q.dtype.itemsize
    sub = _sublane_multiple(q.dtype)
    vmem = _vmem_limit_bytes()

    # 256 tiles fill the 256-wide MXU on v6e/v7x; fall back for v7x's 64 MiB.
    cap = 256
    tq = _pick_tile(S, cap, sub)
    while cap > sub:
        tq = _pick_tile(S, cap, sub)
        est = item * 8 * tq * H + 4 * (tq * H + 8 * NH * tq)
        if est <= int(0.7 * vmem):
            break
        cap //= 2
    tk = tq
    grid = (B, S // tq, S // tk)

    kernel = functools.partial(flash_attn_kernel, tq=tq, tk=tk)
    q_spec = pl.BlockSpec((1, NH, tq, D), lambda b, i, j: (b, 0, i, 0))
    # Clamp the KV block index for fully-masked causal blocks: the index stays
    # unchanged across those steps, so Pallas skips the (dead) K/V DMA.
    kv_spec = pl.BlockSpec(
        (1, NH, tk, D),
        lambda b, i, j: (b, 0, jnp.minimum(j, ((i + 1) * tq - 1) // tk), 0))
    o_spec = pl.BlockSpec((1, tq, H), lambda b, i, j: (b, i, 0))

    return pl.pallas_call(
        kernel,
        out_shape=jax.ShapeDtypeStruct((B, S, H), q.dtype),
        grid=grid,
        in_specs=[q_spec, kv_spec, kv_spec],
        out_specs=o_spec,
        scratch_shapes=[
            pltpu.VMEM((NH, tq, 1), jnp.float32),   # running max
            pltpu.VMEM((NH, tq, 1), jnp.float32),   # running sum
            pltpu.VMEM((NH, tq, D), jnp.float32),   # output accumulator
        ],
        compiler_params=pltpu.CompilerParams(
            dimension_semantics=("parallel", "parallel", "arbitrary"),
            vmem_limit_bytes=vmem,
        ),
    )(q, k, v)


# ----------------------------------------------------------------------------
# Tiled linear (used for the output projection)
# ----------------------------------------------------------------------------
def linear_kernel(x_ref, w_ref, b_ref, o_ref, acc_ref):
    kk = pl.program_id(2)

    @pl.when(kk == 0)
    def _init():
        acc_ref[...] = jnp.zeros_like(acc_ref)

    acc_ref[...] += jnp.dot(x_ref[...], w_ref[...],
                            preferred_element_type=jnp.float32)

    @pl.when(kk == pl.num_programs(2) - 1)
    def _finalize():
        o_ref[...] = (acc_ref[...] + b_ref[...]).astype(o_ref.dtype)


def linear(x, w, b):
    M, K = x.shape
    _, N = w.shape
    sub = _sublane_multiple(x.dtype)
    tm = _pick_tile(M, 256, sub)
    tn = _pick_tile(N, 256, 128)
    tk = _pick_tile(K, 512, 128)
    grid = (M // tm, N // tn, K // tk)

    return pl.pallas_call(
        linear_kernel,
        out_shape=jax.ShapeDtypeStruct((M, N), x.dtype),
        grid=grid,
        in_specs=[
            pl.BlockSpec((tm, tk), lambda i, j, k: (i, k)),
            pl.BlockSpec((tk, tn), lambda i, j, k: (k, j)),
            pl.BlockSpec((1, tn), lambda i, j, k: (0, j)),
        ],
        out_specs=pl.BlockSpec((tm, tn), lambda i, j, k: (i, j)),
        scratch_shapes=[pltpu.VMEM((tm, tn), jnp.float32)],
        compiler_params=pltpu.CompilerParams(
            dimension_semantics=("parallel", "parallel", "arbitrary"),
            vmem_limit_bytes=_vmem_limit_bytes(),
        ),
    )(x, w, b.reshape(1, N))


# ----------------------------------------------------------------------------
# RoPE tables  (built once at init, NOT per forward call)
# ----------------------------------------------------------------------------
# TODO(synk): the reference apply_rotary_pos_emb broadcasts a head_dim-wide
# cos/sin against a head_dim//4-wide tensor, which errors for head_dim > 4;
# we keep the intended semantics: rotate the head_dim//4 adjacent even/odd
# pairs of the first half of head_dim with angles t*inv_freq[j], pass the rest.
def make_rope_tables(seq_len, head_dim, base=10000.0):
    """Per-head [S, head_dim] cos/sin tables with the pair sign pattern baked in."""
    n_pairs = head_dim // 4
    inv_freq = 1.0 / (base ** (np.arange(0, head_dim, 2, dtype=np.float32) / head_dim))
    t = np.arange(seq_len, dtype=np.float32)
    freqs = np.einsum("i,j->ij", t, inv_freq)[:, :n_pairs]      # [S, n_pairs]
    cos_p, sin_p = np.cos(freqs), np.sin(freqs)

    cos_d = np.ones((seq_len, head_dim), np.float32)
    sin_d = np.zeros((seq_len, head_dim), np.float32)
    cos_d[:, 0:2 * n_pairs:2] = cos_p
    cos_d[:, 1:2 * n_pairs:2] = cos_p
    sin_d[:, 0:2 * n_pairs:2] = -sin_p
    sin_d[:, 1:2 * n_pairs:2] = sin_p
    return jnp.asarray(cos_d), jnp.asarray(sin_d)


# ----------------------------------------------------------------------------
# Full module forward
# ----------------------------------------------------------------------------
def multi_head_attention(x, params, *, num_heads, use_rope=True, rope_tables=None):
    B, S, H = x.shape
    D = H // num_heads
    scale = D ** (-0.5)

    if use_rope:
        if rope_tables is None:
            rope_tables = make_rope_tables(S, D)   # prefer passing precomputed tables
        cos, sin = rope_tables
    else:
        cos = jnp.ones((S, D), jnp.float32)
        sin = jnp.zeros((S, D), jnp.float32)

    # Fold the 1/sqrt(head_dim) softmax scale into the q projection (free;
    # RoPE is linear in q so scaling commutes).
    wq = params["wq"] * scale
    bq = params["bq"] * scale

    q, k, v = qkv_proj_rope(
        x, wq, params["wk"], params["wv"],
        bq, params["bk"], params["bv"],
        cos, sin, num_heads=num_heads, use_rope=use_rope)      # each [B, NH, S, D]

    attn = flash_attention(q, k, v)                            # [B, S, H]

    out = linear(attn.reshape(B * S, H), params["wo"], params["bo"]).reshape(B, S, H)
    # TODO(synk): attention/resid dropout are identity in eval mode; the
    # past_key_value / use_cache KV-cache path and explicit attention_mask
    # input are not implemented (causal mask is built in-kernel).
    return out


# ----------------------------------------------------------------------------
# Pure-JAX reference for a silent correctness check
# ----------------------------------------------------------------------------
def _make_rope_cos_sin_ref(seq_len, head_dim, base=10000.0, dtype=jnp.float32):
    inv_freq = 1.0 / (base ** (jnp.arange(0, head_dim, 2, dtype=jnp.float32) / head_dim))
    t = jnp.arange(seq_len, dtype=jnp.float32)
    freqs = jnp.einsum("i,j->ij", t, inv_freq)[:, : head_dim // 4]
    return jnp.cos(freqs).astype(dtype), jnp.sin(freqs).astype(dtype)


def _apply_rope_ref(x, cos, sin):
    d = x.shape[-1]
    x_rot, x_pass = x[..., : d // 2], x[..., d // 2:]
    x_even, x_odd = x_rot[..., ::2], x_rot[..., 1::2]
    r_even = x_even * cos - x_odd * sin
    r_odd = x_odd * cos + x_even * sin
    rotated = jnp.stack([r_even, r_odd], axis=-1).reshape(x_rot.shape)
    return jnp.concatenate([rotated, x_pass], axis=-1)


def _reference(x, params, *, num_heads, use_rope=True):
    B, S, H = x.shape
    D = H // num_heads
    scale = D ** (-0.5)
    lin = lambda xx, w, b: xx @ w + b
    q = lin(x, params["wq"], params["bq"]).reshape(B, S, num_heads, D).transpose(0, 2, 1, 3)
    k = lin(x, params["wk"], params["bk"]).reshape(B, S, num_heads, D).transpose(0, 2, 1, 3)
    v = lin(x, params["wv"], params["bv"]).reshape(B, S, num_heads, D).transpose(0, 2, 1, 3)
    if use_rope:
        cos, sin = _make_rope_cos_sin_ref(S, D, dtype=x.dtype)
        q, k = _apply_rope_ref(q, cos, sin), _apply_rope_ref(k, cos, sin)
    scores = jnp.einsum("bhqd,bhkd->bhqk", q, k) * scale
    mask = jnp.triu(jnp.ones((S, S), bool), k=1)
    scores = jnp.where(mask, -jnp.inf, scores)
    probs = jax.nn.softmax(scores.astype(jnp.float32), axis=-1)
    o = jnp.einsum("bhqk,bhkd->bhqd", probs, v).transpose(0, 2, 1, 3).reshape(B, S, H)
    return lin(o, params["wo"], params["bo"])


if __name__ == "__main__":
    # config: hidden_size=32, num_heads=4 (head_dim=8), seq=8, batch=2,
    # bias=True, use_rope=True, dropout=0.0 (eval mode)
    B, S, H, NH = 2, 8, 32, 4
    D = H // NH
    key = jax.random.PRNGKey(0)
    ks = jax.random.split(key, 9)
    init = lambda k_, shape: jax.random.normal(k_, shape, jnp.float32) * 0.05

    params = {
        "wq": init(ks[0], (H, H)), "bq": init(ks[1], (H,)),
        "wk": init(ks[2], (H, H)), "bk": init(ks[3], (H,)),
        "wv": init(ks[4], (H, H)), "bv": init(ks[5], (H,)),
        "wo": init(ks[6], (H, H)), "bo": init(ks[7], (H,)),
    }
    x = jax.random.normal(ks[8], (B, S, H), jnp.float32)

    rope_tables = make_rope_tables(S, D)           # built once, hoisted out of forward

    with jax.default_matmul_precision("highest"):
        out = multi_head_attention(x, params, num_heads=NH, use_rope=True,
                                   rope_tables=rope_tables)
        out = jax.block_until_ready(out)
        ref = _reference(x, params, num_heads=NH, use_rope=True)

    assert out.shape == (B, S, H)
    assert jnp.allclose(out, ref, atol=1e-3, rtol=1e-3), "mismatch vs reference"

    print("KERNEL_OK")
</pallas_src>

<mosaic_0001>
module attributes {stable_mosaic.version = 11 : i64} {
  func.func @qkv_rope_kernel(%arg0: i32, %arg1: i32, %arg2: i32, %arg3: memref<1x8x32xf32, #tpu.memory_space<vmem>>, %arg4: memref<32x32xf32, #tpu.memory_space<vmem>>, %arg5: memref<32x32xf32, #tpu.memory_space<vmem>>, %arg6: memref<32x32xf32, #tpu.memory_space<vmem>>, %arg7: memref<1x32xf32, #tpu.memory_space<vmem>>, %arg8: memref<1x32xf32, #tpu.memory_space<vmem>>, %arg9: memref<1x32xf32, #tpu.memory_space<vmem>>, %arg10: memref<8x8xf32, #tpu.memory_space<vmem>>, %arg11: memref<8x8xf32, #tpu.memory_space<vmem>>, %arg12: memref<1x4x8x8xf32, #tpu.memory_space<vmem>>, %arg13: memref<1x4x8x8xf32, #tpu.memory_space<vmem>>, %arg14: memref<1x4x8x8xf32, #tpu.memory_space<vmem>>, %arg15: memref<8x32xf32, #tpu.memory_space<vmem>>, %arg16: memref<8x32xf32, #tpu.memory_space<vmem>>, %arg17: memref<8x32xf32, #tpu.memory_space<vmem>>) attributes {dimension_semantics = [#tpu.dimension_semantics<parallel>, #tpu.dimension_semantics<parallel>, #tpu.dimension_semantics<arbitrary>], iteration_bounds = array<i64: 2, 1, 1>, scalar_prefetch = 0 : i64, scratch_operands = 3 : i64, tpu.core_type = #tpu.core_type<tc>, window_params = [{transform_indices = @transform_0, window_bounds = array<i64: 1, 8, 32>}, {transform_indices = @transform_1, window_bounds = array<i64: 32, 32>}, {transform_indices = @transform_2, window_bounds = array<i64: 32, 32>}, {transform_indices = @transform_3, window_bounds = array<i64: 32, 32>}, {pipeline_mode = #tpu.pipeline_mode<synchronous>, transform_indices = @transform_4, window_bounds = array<i64: 1, 32>}, {pipeline_mode = #tpu.pipeline_mode<synchronous>, transform_indices = @transform_5, window_bounds = array<i64: 1, 32>}, {pipeline_mode = #tpu.pipeline_mode<synchronous>, transform_indices = @transform_6, window_bounds = array<i64: 1, 32>}, {transform_indices = @transform_7, window_bounds = array<i64: 8, 8>}, {transform_indices = @transform_8, window_bounds = array<i64: 8, 8>}, {transform_indices = @transform_9, window_bounds = array<i64: 1, 4, 8, 8>}, {transform_indices = @transform_10, window_bounds = array<i64: 1, 4, 8, 8>}, {transform_indices = @transform_11, window_bounds = array<i64: 1, 4, 8, 8>}]} {
    %c0_i32 = arith.constant 0 : i32
    %0 = arith.cmpi eq, %arg2, %c0_i32 : i32
    %1 = arith.extui %0 : i1 to i32
    %c0_i32_0 = arith.constant 0 : i32
    %2 = arith.cmpi ne, %1, %c0_i32_0 : i32
    scf.if %2 {
      %cst_25 = arith.constant 0.000000e+00 : f32
      %23 = vector.broadcast %cst_25 : f32 to vector<8x32xf32>
      %c0_26 = arith.constant 0 : index
      %c0_27 = arith.constant 0 : index
      %24 = vector.load %arg15[%c0_26, %c0_27] : memref<8x32xf32, #tpu.memory_space<vmem>>, vector<8x32xf32>
      tpu.vector_store %arg15[%c0_26, %c0_27], %23 {strides = array<i32>} : memref<8x32xf32, #tpu.memory_space<vmem>>, vector<8x32xf32>,
      %cst_28 = arith.constant 0.000000e+00 : f32
      %25 = vector.broadcast %cst_28 : f32 to vector<8x32xf32>
      %c0_29 = arith.constant 0 : index
      %c0_30 = arith.constant 0 : index
      %26 = vector.load %arg16[%c0_29, %c0_30] : memref<8x32xf32, #tpu.memory_space<vmem>>, vector<8x32xf32>
      tpu.vector_store %arg16[%c0_29, %c0_30], %25 {strides = array<i32>} : memref<8x32xf32, #tpu.memory_space<vmem>>, vector<8x32xf32>,
      %cst_31 = arith.constant 0.000000e+00 : f32
      %27 = vector.broadcast %cst_31 : f32 to vector<8x32xf32>
      %c0_32 = arith.constant 0 : index
      %c0_33 = arith.constant 0 : index
      %28 = vector.load %arg17[%c0_32, %c0_33] : memref<8x32xf32, #tpu.memory_space<vmem>>, vector<8x32xf32>
      tpu.vector_store %arg17[%c0_32, %c0_33], %27 {strides = array<i32>} : memref<8x32xf32, #tpu.memory_space<vmem>>, vector<8x32xf32>,
    } else {
    }
    %c0 = arith.constant 0 : index
    %c0_1 = arith.constant 0 : index
    %c0_2 = arith.constant 0 : index
    %3 = vector.load %arg3[%c0, %c0_1, %c0_2] : memref<1x8x32xf32, #tpu.memory_space<vmem>>, vector<1x8x32xf32>
    %4 = vector.shape_cast %3 : vector<1x8x32xf32> to vector<8x32xf32>
    %c0_3 = arith.constant 0 : index
    %c0_4 = arith.constant 0 : index
    %5 = vector.load %arg15[%c0_3, %c0_4] : memref<8x32xf32, #tpu.memory_space<vmem>>, vector<8x32xf32>
    %c0_5 = arith.constant 0 : index
    %c0_6 = arith.constant 0 : index
    %6 = vector.load %arg4[%c0_5, %c0_6] : memref<32x32xf32, #tpu.memory_space<vmem>>, vector<32x32xf32>
    %cst = arith.constant dense<0.000000e+00> : vector<8x32xf32>
    %7 = tpu.matmul %4, %6, %cst {dimension_numbers = #tpu.dot_dimension_numbers<[1], [0], [0], [1], [0, 0, 1, 1], [], []>, precision = #tpu.contract_precision<fp32>} : vector<8x32xf32>, vector<32x32xf32>, vector<8x32xf32> -> vector<8x32xf32>
    %8 = arith.addf %5, %7 : vector<8x32xf32>
    %c0_7 = arith.constant 0 : index
    %c0_8 = arith.constant 0 : index
    %9 = vector.load %arg15[%c0_7, %c0_8] : memref<8x32xf32, #tpu.memory_space<vmem>>, vector<8x32xf32>
    tpu.vector_store %arg15[%c0_7, %c0_8], %8 {strides = array<i32>} : memref<8x32xf32, #tpu.memory_space<vmem>>, vector<8x32xf32>,
    %c0_9 = arith.constant 0 : index
    %c0_10 = arith.constant 0 : index
    %10 = vector.load %arg16[%c0_9, %c0_10] : memref<8x32xf32, #tpu.memory_space<vmem>>, vector<8x32xf32>
    %c0_11 = arith.constant 0 : index
    %c0_12 = arith.constant 0 : index
    %11 = vector.load %arg5[%c0_11, %c0_12] : memref<32x32xf32, #tpu.memory_space<vmem>>, vector<32x32xf32>
    %cst_13 = arith.constant dense<0.000000e+00> : vector<8x32xf32>
    %12 = tpu.matmul %4, %11, %cst_13 {dimension_numbers = #tpu.dot_dimension_numbers<[1], [0], [0], [1], [0, 0, 1, 1], [], []>, precision = #tpu.contract_precision<fp32>} : vector<8x32xf32>, vector<32x32xf32>, vector<8x32xf32> -> vector<8x32xf32>
    %13 = arith.addf %10, %12 : vector<8x32xf32>
    %c0_14 = arith.constant 0 : index
    %c0_15 = arith.constant 0 : index
    %14 = vector.load %arg16[%c0_14, %c0_15] : memref<8x32xf32, #tpu.memory_space<vmem>>, vector<8x32xf32>
    tpu.vector_store %arg16[%c0_14, %c0_15], %13 {strides = array<i32>} : memref<8x32xf32, #tpu.memory_space<vmem>>, vector<8x32xf32>,
    %c0_16 = arith.constant 0 : index
    %c0_17 = arith.constant 0 : index
    %15 = vector.load %arg17[%c0_16, %c0_17] : memref<8x32xf32, #tpu.memory_space<vmem>>, vector<8x32xf32>
    %c0_18 = arith.constant 0 : index
    %c0_19 = arith.constant 0 : index
    %16 = vector.load %arg6[%c0_18, %c0_19] : memref<32x32xf32, #tpu.memory_space<vmem>>, vector<32x32xf32>
    %cst_20 = arith.constant dense<0.000000e+00> : vector<8x32xf32>
    %17 = tpu.matmul %4, %16, %cst_20 {dimension_numbers = #tpu.dot_dimension_numbers<[1], [0], [0], [1], [0, 0, 1, 1], [], []>, precision = #tpu.contract_precision<fp32>} : vector<8x32xf32>, vector<32x32xf32>, vector<8x32xf32> -> vector<8x32xf32>
    %18 = arith.addf %15, %17 : vector<8x32xf32>
    %c0_21 = arith.constant 0 : index
    %c0_22 = arith.constant 0 : index
    %19 = vector.load %arg17[%c0_21, %c0_22] : memref<8x32xf32, #tpu.memory_space<vmem>>, vector<8x32xf32>
    tpu.vector_store %arg17[%c0_21, %c0_22], %18 {strides = array<i32>} : memref<8x32xf32, #tpu.memory_space<vmem>>, vector<8x32xf32>,
    %c0_i32_23 = arith.constant 0 : i32
    %20 = arith.cmpi eq, %arg2, %c0_i32_23 : i32
    %21 = arith.extui %20 : i1 to i32
    %c0_i32_24 = arith.constant 0 : i32
    %22 = arith.cmpi ne, %21, %c0_i32_24 : i32
    scf.if %22 {
      %c0_25 = arith.constant 0 : index
      %c0_26 = arith.constant 0 : index
      %23 = vector.load %arg15[%c0_25, %c0_26] : memref<8x32xf32, #tpu.memory_space<vmem>>, vector<8x32xf32>
      %c0_27 = arith.constant 0 : index
      %c0_28 = arith.constant 0 : index
      %24 = vector.load %arg7[%c0_27, %c0_28] : memref<1x32xf32, #tpu.memory_space<vmem>>, vector<1x32xf32>
      %25 = vector.broadcast %24 : vector<1x32xf32> to vector<8x32xf32>
      %26 = arith.addf %23, %25 : vector<8x32xf32>
      %c0_29 = arith.constant 0 : index
      %c0_30 = arith.constant 0 : index
      %27 = vector.load %arg16[%c0_29, %c0_30] : memref<8x32xf32, #tpu.memory_space<vmem>>, vector<8x32xf32>
      %c0_31 = arith.constant 0 : index
      %c0_32 = arith.constant 0 : index
      %28 = vector.load %arg8[%c0_31, %c0_32] : memref<1x32xf32, #tpu.memory_space<vmem>>, vector<1x32xf32>
      %29 = vector.broadcast %28 : vector<1x32xf32> to vector<8x32xf32>
      %30 = arith.addf %27, %29 : vector<8x32xf32>
      %c0_33 = arith.constant 0 : index
      %c0_34 = arith.constant 0 : index
      %31 = vector.load %arg17[%c0_33, %c0_34] : memref<8x32xf32, #tpu.memory_space<vmem>>, vector<8x32xf32>
      %c0_35 = arith.constant 0 : index
      %c0_36 = arith.constant 0 : index
      %32 = vector.load %arg9[%c0_35, %c0_36] : memref<1x32xf32, #tpu.memory_space<vmem>>, vector<1x32xf32>
      %33 = vector.broadcast %32 : vector<1x32xf32> to vector<8x32xf32>
      %34 = arith.addf %31, %33 : vector<8x32xf32>
      %c0_37 = arith.constant 0 : index
      %c0_38 = arith.constant 0 : index
      %35 = vector.load %arg10[%c0_37, %c0_38] : memref<8x8xf32, #tpu.memory_space<vmem>>, vector<8x8xf32>
      %36 = tpu.concatenate %35, %35, %35, %35 in 1 : vector<8x8xf32>, vector<8x8xf32>, vector<8x8xf32>, vector<8x8xf32> -> vector<8x32xf32>
      %c0_39 = arith.constant 0 : index
      %c0_40 = arith.constant 0 : index
      %37 = vector.load %arg11[%c0_39, %c0_40] : memref<8x8xf32, #tpu.memory_space<vmem>>, vector<8x8xf32>
      %38 = tpu.concatenate %37, %37, %37, %37 in 1 : vector<8x8xf32>, vector<8x8xf32>, vector<8x8xf32>, vector<8x8xf32> -> vector<8x32xf32>
      %39 = tpu.iota {dimensions = array<i32: 1>} : vector<8x32xi32>
      %c2_i32 = arith.constant 2 : i32
      %c0_i32_41 = arith.constant 0 : i32
      %40 = arith.cmpi eq, %c2_i32, %c0_i32_41 : i32
      %c1_i32 = arith.constant 1 : i32
      %41 = arith.select %40, %c1_i32, %c2_i32 : i32
      %42 = vector.broadcast %41 : i32 to vector<8x32xi32>
      %43 = arith.remsi %39, %42 : vector<8x32xi32>
      %c0_i32_42 = arith.constant 0 : i32
      %44 = vector.broadcast %c0_i32_42 : i32 to vector<8x32xi32>
      %45 = arith.cmpi ne, %43, %44 : vector<8x32xi32>
      %c0_i32_43 = arith.constant 0 : i32
      %46 = vector.broadcast %c0_i32_43 : i32 to vector<8x32xi32>
      %47 = arith.cmpi slt, %43, %46 : vector<8x32xi32>
      %c0_i32_44 = arith.constant 0 : i32
      %48 = arith.cmpi slt, %41, %c0_i32_44 : i32
      %49 = vector.broadcast %48 : i1 to vector<8x32xi1>
      %50 = vector.broadcast %49 : vector<8x32xi1> to vector<8x32xi1>
      %51 = arith.xori %47, %50 : vector<8x32xi1>
      %52 = arith.andi %51, %45 : vector<8x32xi1>
      %53 = vector.broadcast %41 : i32 to vector<8x32xi32>
      %54 = arith.addi %43, %53 : vector<8x32xi32>
      %55 = arith.select %52, %54, %43 : vector<8x32xi1>, vector<8x32xi32>
      %c0_i32_45 = arith.constant 0 : i32
      %56 = vector.broadcast %c0_i32_45 : i32 to vector<8x32xi32>
      %57 = arith.cmpi eq, %55, %56 : vector<8x32xi32>
      %c31_i32 = arith.constant 31 : i32
      %58 = tpu.dynamic_rotate %26 by %c31_i32 dim 1 : vector<8x32xf32>, i32 -> vector<8x32xf32>
      %c1_i32_46 = arith.constant 1 : i32
      %59 = tpu.dynamic_rotate %26 by %c1_i32_46 dim 1 : vector<8x32xf32>, i32 -> vector<8x32xf32>
      %60 = arith.mulf %26, %36 : vector<8x32xf32>
      %61 = arith.select %57, %58, %59 : vector<8x32xi1>, vector<8x32xf32>
      %62 = arith.mulf %61, %38 : vector<8x32xf32>
      %63 = arith.addf %60, %62 : vector<8x32xf32>
      %c31_i32_47 = arith.constant 31 : i32
      %64 = tpu.dynamic_rotate %30 by %c31_i32_47 dim 1 : vector<8x32xf32>, i32 -> vector<8x32xf32>
      %c1_i32_48 = arith.constant 1 : i32
      %65 = tpu.dynamic_rotate %30 by %c1_i32_48 dim 1 : vector<8x32xf32>, i32 -> vector<8x32xf32>
      %66 = arith.mulf %30, %36 : vector<8x32xf32>
      %67 = arith.select %57, %64, %65 : vector<8x32xi1>, vector<8x32xf32>
      %68 = arith.mulf %67, %38 : vector<8x32xf32>
      %69 = arith.addf %66, %68 : vector<8x32xf32>
      %70 = vector.shape_cast %63 : vector<8x32xf32> to vector<8x4x8xf32>
      %71 = tpu.transpose %70, [1, 0, 2] : vector<8x4x8xf32> -> vector<4x8x8xf32>
      %c0_49 = arith.constant 0 : index
      %c0_50 = arith.constant 0 : index
      %c0_51 = arith.constant 0 : index
      %c0_52 = arith.constant 0 : index
      %72 = vector.load %arg12[%c0_49, %c0_50, %c0_51, %c0_52] : memref<1x4x8x8xf32, #tpu.memory_space<vmem>>, vector<1x4x8x8xf32>
      %73 = vector.shape_cast %72 : vector<1x4x8x8xf32> to vector<4x8x8xf32>
      %74 = vector.shape_cast %71 : vector<4x8x8xf32> to vector<1x4x8x8xf32>
      tpu.vector_store %arg12[%c0_49, %c0_50, %c0_51, %c0_52], %74 {strides = array<i32>} : memref<1x4x8x8xf32, #tpu.memory_space<vmem>>, vector<1x4x8x8xf32>,
      %75 = vector.shape_cast %69 : vector<8x32xf32> to vector<8x4x8xf32>
      %76 = tpu.transpose %75, [1, 0, 2] : vector<8x4x8xf32> -> vector<4x8x8xf32>
      %c0_53 = arith.constant 0 : index
      %c0_54 = arith.constant 0 : index
      %c0_55 = arith.constant 0 : index
      %c0_56 = arith.constant 0 : index
      %77 = vector.load %arg13[%c0_53, %c0_54, %c0_55, %c0_56] : memref<1x4x8x8xf32, #tpu.memory_space<vmem>>, vector<1x4x8x8xf32>
      %78 = vector.shape_cast %77 : vector<1x4x8x8xf32> to vector<4x8x8xf32>
      %79 = vector.shape_cast %76 : vector<4x8x8xf32> to vector<1x4x8x8xf32>
      tpu.vector_store %arg13[%c0_53, %c0_54, %c0_55, %c0_56], %79 {strides = array<i32>} : memref<1x4x8x8xf32, #tpu.memory_space<vmem>>, vector<1x4x8x8xf32>,
      %80 = vector.shape_cast %34 : vector<8x32xf32> to vector<8x4x8xf32>
      %81 = tpu.transpose %80, [1, 0, 2] : vector<8x4x8xf32> -> vector<4x8x8xf32>
      %c0_57 = arith.constant 0 : index
      %c0_58 = arith.constant 0 : index
      %c0_59 = arith.constant 0 : index
      %c0_60 = arith.constant 0 : index
      %82 = vector.load %arg14[%c0_57, %c0_58, %c0_59, %c0_60] : memref<1x4x8x8xf32, #tpu.memory_space<vmem>>, vector<1x4x8x8xf32>
      %83 = vector.shape_cast %82 : vector<1x4x8x8xf32> to vector<4x8x8xf32>
      %84 = vector.shape_cast %81 : vector<4x8x8xf32> to vector<1x4x8x8xf32>
      tpu.vector_store %arg14[%c0_57, %c0_58, %c0_59, %c0_60], %84 {strides = array<i32>} : memref<1x4x8x8xf32, #tpu.memory_space<vmem>>, vector<1x4x8x8xf32>,
    } else {
    }
    return
  }
  func.func @transform_0(%arg0: i32, %arg1: i32, %arg2: i32) -> (i32, i32, i32) {
    %c0_i32 = arith.constant 0 : i32
    return %arg0, %arg1, %arg2 : i32, i32, i32
  }
  func.func @transform_1(%arg0: i32, %arg1: i32, %arg2: i32) -> (i32, i32) {
    %c0_i32 = arith.constant 0 : i32
    %c0_i32_0 = arith.constant 0 : i32
    return %arg2, %c0_i32 : i32, i32
  }
  func.func @transform_2(%arg0: i32, %arg1: i32, %arg2: i32) -> (i32, i32) {
    %c0_i32 = arith.constant 0 : i32
    %c0_i32_0 = arith.constant 0 : i32
    return %arg2, %c0_i32 : i32, i32
  }
  func.func @transform_3(%arg0: i32, %arg1: i32, %arg2: i32) -> (i32, i32) {
    %c0_i32 = arith.constant 0 : i32
    %c0_i32_0 = arith.constant 0 : i32
    return %arg2, %c0_i32 : i32, i32
  }
  func.func @transform_4(%arg0: i32, %arg1: i32, %arg2: i32) -> (i32, i32) {
    %c0_i32 = arith.constant 0 : i32
    %c0_i32_0 = arith.constant 0 : i32
    %c0_i32_1 = arith.constant 0 : i32
    return %c0_i32, %c0_i32_0 : i32, i32
  }
  func.func @transform_5(%arg0: i32, %arg1: i32, %arg2: i32) -> (i32, i32) {
    %c0_i32 = arith.constant 0 : i32
    %c0_i32_0 = arith.constant 0 : i32
    %c0_i32_1 = arith.constant 0 : i32
    return %c0_i32, %c0_i32_0 : i32, i32
  }
  func.func @transform_6(%arg0: i32, %arg1: i32, %arg2: i32) -> (i32, i32) {
    %c0_i32 = arith.constant 0 : i32
    %c0_i32_0 = arith.constant 0 : i32
    %c0_i32_1 = arith.constant 0 : i32
    return %c0_i32, %c0_i32_0 : i32, i32
  }
  func.func @transform_7(%arg0: i32, %arg1: i32, %arg2: i32) -> (i32, i32) {
    %c0_i32 = arith.constant 0 : i32
    %c0_i32_0 = arith.constant 0 : i32
    return %arg1, %c0_i32 : i32, i32
  }
  func.func @transform_8(%arg0: i32, %arg1: i32, %arg2: i32) -> (i32, i32) {
    %c0_i32 = arith.constant 0 : i32
    %c0_i32_0 = arith.constant 0 : i32
    return %arg1, %c0_i32 : i32, i32
  }
  func.func @transform_9(%arg0: i32, %arg1: i32, %arg2: i32) -> (i32, i32, i32, i32) {
    %c0_i32 = arith.constant 0 : i32
    %c0_i32_0 = arith.constant 0 : i32
    %c0_i32_1 = arith.constant 0 : i32
    return %arg0, %c0_i32, %arg1, %c0_i32_0 : i32, i32, i32, i32
  }
  func.func @transform_10(%arg0: i32, %arg1: i32, %arg2: i32) -> (i32, i32, i32, i32) {
    %c0_i32 = arith.constant 0 : i32
    %c0_i32_0 = arith.constant 0 : i32
    %c0_i32_1 = arith.constant 0 : i32
    return %arg0, %c0_i32, %arg1, %c0_i32_0 : i32, i32, i32, i32
  }
  func.func @transform_11(%arg0: i32, %arg1: i32, %arg2: i32) -> (i32, i32, i32, i32) {
    %c0_i32 = arith.constant 0 : i32
    %c0_i32_0 = arith.constant 0 : i32
    %c0_i32_1 = arith.constant 0 : i32
    return %arg0, %c0_i32, %arg1, %c0_i32_0 : i32, i32, i32, i32
  }
}

</mosaic_0001>

<bundles_post_ra>
// kernel: tpu_custom_call.1
= control target key start
LH: loop header
LB: loop body
LE: loop exit
PB: predicated region body
PF: predicated region fallthrough
CT: control target
= control target key end

     0   :  { %s3066_s0 = inlined_call_operand.hbm [shape: f32[2,8,32], index: 0, kind: input, shape index: {}]   ;;  %s3067_s1 = inlined_call_operand.hbm [shape: f32[32,32], index: 1, kind: input, shape index: {}]   ;;  %s3068_s2 = inlined_call_operand.hbm [shape: f32[32,32], index: 2, kind: input, shape index: {}]   ;;  %s3069_s3 = inlined_call_operand.hbm [shape: f32[32,32], index: 3, kind: input, shape index: {}]   ;;  %s3070_s4 = inlined_call_operand.vmem [shape: f32[1,32], index: 4, kind: input, shape index: {}]   ;;  %s3071_s5 = inlined_call_operand.vmem [shape: f32[1,32], index: 5, kind: input, shape index: {}]   ;;  %s3072_s6 = inlined_call_operand.vmem [shape: f32[1,32], index: 6, kind: input, shape index: {}]   ;;  %s3073_s7 = inlined_call_operand.hbm [shape: f32[8,8], index: 7, kind: input, shape index: {}]   ;;  %s3074_s8 = inlined_call_operand.hbm [shape: f32[8,8], index: 8, kind: input, shape index: {}]   ;;  %s3075_s9 = inlined_call_operand.hbm [shape: f32[2,4,8,8], index: 9, kind: output, shape index: {0}]   ;;  %s3076_s10 = inlined_call_operand.hbm [shape: f32[2,4,8,8], index: 10, kind: output, shape index: {1}]   ;;  %s3077_s11 = inlined_call_operand.hbm [shape: f32[2,4,8,8], index: 11, kind: output, shape index: {2}]  }
   0x1   :  { %3083 = sst [smem:[#allocation26_spill]] %s3067_s1 }
   0x2   :  { %3084 = sst [smem:[#allocation27_spill]] %s3068_s2 }
   0x3   :  { %3085 = sst [smem:[#allocation28_spill]] %s3069_s3 }
   0x4   :  { %3086 = sst [smem:[#allocation29_spill]] %s3073_s7 }
   0x5   :  { %3087 = sst [smem:[#allocation30_spill]] %s3076_s10 }
   0x6   :  { %3088 = sst [smem:[#allocation31_spill]] %s3077_s11 }
   0x7   :  { %17 = vsyncpa [#allocation6], 0 }
   0x8   :  { %19 = vsyncpa [#allocation6 + $0x1], 0 }
   0x9   :  { %20 = vsyncpa [#allocation9], 0 }
   0xa   :  { %21 = vsyncpa [#allocation12], 0 }
   0xb   :  { %22 = vsyncpa [#allocation15], 0 }
   0xc   :  { %23 = vsyncpa [#allocation7], 0 }
   0xd   :  { %25 = vsyncpa [#allocation7 + $0x1], 0 }
   0xe   :  { %26 = vsyncpa [#allocation18], 0 }
   0xf   :  { %28 = vsyncpa [#allocation18 + $0x1], 0  ;;  %s2505_s17 = smov 0   ;;  %s2507_s18 = smov 0  }
  0x10   :  { %s2509_s19 = smov 0   ;;  %s2511_s20 = smov 0  }
  0x11   :  { %s2513_s21 = smov 0   ;;  %s2515_s22 = smov 0  }
  0x12 LB: > { %s2536_s23 = sadd.s32 4294967295, %s2423_s22   ;;  %p1915_p0 = scmp.ge.s32.totalorder %s2423_s22, 1  ;;  %s2423_s22 = sphi %s2515_s22, %s34_s22   ;;  %s2419_s21 = sphi %s2513_s21, %s3107_s21   ;;  %s2415_s20 = sphi %s2511_s20, %s3106_s20   ;;  %s2411_s19 = sphi %s2509_s19, %s3105_s19   ;;  %s2407_s18 = sphi %s2507_s18, %s3104_s18   ;;  %s2403_s17 = sphi %s2505_s17, %s3103_s17  }
  0x13   : > { %p78_p1 = scmp.eq.s32.totalorder %s2536_s23, 0  ;;  %p365_p2 = scmp.lt.s32.totalorder %s2423_s22, 3 }
  0x14   : > { %s3089_s1 = sld [smem:[#allocation26_spill]]  ;;  %s2425_s28 = smov [#allocation8]  }
  0x15   : > { %p2544_p3 = pnand %p1915_p0, %p365_p2  ;;  %s381_s29 = sshll.u32 %s2425_s28, 4  ;;  %s382_s29 = int_to_ptr.vmem [resolvable:$true] %s381_s29 }
  0x16   : > { %p1921_p6 = scmp.ge.s32.totalorder %s2423_s22, 2  ;;  %s3092_s3 = sld [smem:[#allocation28_spill]] }
  0x17   : > { %p1976_p4 = pneg %p2544_p3  ;;  %s2426_s15 = smov 128  }
  0x18   : > { %s2427_s16 = smov 8   ;;  %s2428_s24 = smov [#allocation11]  }
  0x19   : > { %p2552_p5 = pnand %p1976_p4, %p78_p1  ;;  %s415_s25 = sshll.u32 %s2428_s24, 4  ;;  %s416_s25 = int_to_ptr.vmem [resolvable:$true] %s415_s25 }
  0x1a   : > { %s379_s26 = sshll.u32 %s3089_s1, 4  ;;  %s3093_s2 = sld [smem:[#allocation27_spill]]  ;;  %s380_s26 = int_to_ptr.hbm [resolvable:$true] %s379_s26 }
  0x1b   : > { %1979 = dma.hbm_to_vmem [thread:$0]  (!%p2552_p5), %s380_s26, 512, %s382_s29, [#allocation9], %s2426_s15, %s2426_s15, %s2427_s16  }
  0x1c   : > { %s413_s14 = sshll.u32 %s3092_s3, 4  ;;  %s3094_s7 = sld [smem:[#allocation29_spill]]  ;;  %s414_s14 = int_to_ptr.hbm [resolvable:$true] %s413_s14 }
  0x1d   : > { %1985 = dma.hbm_to_vmem [thread:$0]  (!%p2552_p5), %s414_s14, 512, %s416_s25, [#allocation12], %s2426_s15, %s2426_s15, %s2427_s16  }
  0x1e   : > { %s2429_s3 = smov [#allocation10]   ;;  %s2430_s1 = smov [#allocation13]  }
  0x1f   : > { %s398_s26 = sshll.u32 %s2429_s3, 4  ;;  %s441_s29 = sshll.u32 %s2430_s1, 4  ;;  %s399_s26 = int_to_ptr.vmem [resolvable:$true] %s398_s26  ;;  %s442_s29 = int_to_ptr.vmem [resolvable:$true] %s441_s29 }
  0x20   : > { %s396_s11 = sshll.u32 %s3093_s2, 4  ;;  %s453_s24 = sshll.u32 %s3074_s8, 4  ;;  %s397_s11 = int_to_ptr.hbm [resolvable:$true] %s396_s11  ;;  %s454_s24 = int_to_ptr.hbm [resolvable:$true] %s453_s24 }
  0x21   : > { %1982 = dma.hbm_to_vmem [thread:$0]  (!%p2552_p5), %s397_s11, 512, %s399_s26, [#allocation9], %s2426_s15, %s2426_s15, %s2427_s16  }
  0x22   : > { %s439_s13 = sshll.u32 %s3094_s7, 4  ;;  %s2431_s3 = smov [#allocation14]   ;;  %s440_s13 = int_to_ptr.hbm [resolvable:$true] %s439_s13 }
  0x23   : > { %1988 = dma.hbm_to_vmem [thread:$0]  (!%p2552_p5), %s440_s13, 128, %s442_s29, [#allocation12]  }
  0x24   : > { %s455_s25 = sshll.u32 %s2431_s3, 4  ;;  %s3080_s11 = sadd.s32 4294967294, %s2423_s22   ;;  %s456_s25 = int_to_ptr.vmem [resolvable:$true] %s455_s25 }
  0x25   : > { %1991 = dma.hbm_to_vmem [thread:$0]  (!%p2552_p5), %s454_s24, 128, %s456_s25, [#allocation15]  }
  0x26   : > { %s53_s15 = sadd.s32 1, %s2419_s21  ;;  %s64_s16 = sadd.s32 1, %s2411_s19 }
  0x27   : > { %p55_p7 = scmp.ge.s32.totalorder %s53_s15, 2  ;;  %p71_p8 = scmp.ne.s32.totalorder %s2411_s19, %s2407_s18 }
  0x28   : > { %p72_p9 = scmp.eq.s32.totalorder %s2423_s22, 0  ;;  %p77_p10 = scmp.ne.s32.totalorder %s2407_s18, %s2403_s17 }
  0x29   : > { %s3109_s15 = smov (%p55_p7, %s53_s15), 0  ;;  %p296_p13 = scmp.eq.s32.totalorder %s2536_s23, 1 }
  0x2a   : > { %p2589_p11 = por %p72_p9, %p71_p8  ;;  %p2595_p12 = por %p78_p1, %p77_p10 }
  0x2b   : > { %s57_s12 = ssub.s32 %s2419_s21, %s3109_s15  ;;  %p302_p2 = scmp.eq.s32.totalorder %s3080_s11, 1 }
  0x2c   : > { %p62_p0 = scmp.eq.s32.totalorder %s57_s12, 0  ;;  %p2604_p4 = por %p296_p13, %p71_p8 }
  0x2d   : > { %p2011_p5 = scmp.lt.s32.totalorder %s2423_s22, 2  ;;  %p2612_p7 = por %p302_p2, %p77_p10 }
  0x2e   : > { %s2610_s26 = scalar_select %p62_p0, %s2411_s19, %s64_s16  }
  0x2f   : > { %s466_s29 = sand.u32 1, %s2411_s19   ;;  %s1923_s10 = sshll.u32 %s2419_s21, 3 }
  0x30   : > { %s1922_s14 = sshll.u32 %s466_s29, 3  ;;  %s476_s25 = scalar_lea.hbm %s3066_s0, %s1923_s10 }
  0x31   : > { %s470_s12 = scalar_lea.vmem [#allocation5], %s1922_s14  ;;  %s478_s2 = sshll.u32 %s476_s25, 4  ;;  %s479_s2 = int_to_ptr.hbm [resolvable:$true] %s478_s2 }
  0x32   : > { %s480_s11 = sshll.u32 %s470_s12, 4  ;;  %p1993_p8 = pnand %p2011_p5, %p2589_p11  ;;  %s481_s11 = int_to_ptr.vmem [resolvable:$true] %s480_s11 }
  0x33   : > { %s467_s16 = scalar_lea.sflag [#allocation6], %s466_s29  ;;  %489 = sbr.rel (%p2544_p3) target bundleno = 791 (0x317), region = 56 }
  0x34   : > { %1995 = dma.hbm_to_vmem [thread:$0]  (!%p1993_p8), %s479_s2, 128, %s481_s11, %s467_s16  }
  0x35   : > { %s2626_s7 = sand.u32 (!%p2544_p3), 1, %s2407_s18  }
  0x36   : > { %s1925_s24 = sshll.u32 (!%p2544_p3), %s2626_s7, 3  ;;  %s492_s10 = scalar_lea.sflag (!%p2544_p3), [#allocation6], %s2626_s7 }
  0x37   : > { %s495_s14 = scalar_lea.vmem (!%p2544_p3), [#allocation5], %s1925_s24 }
  0x38   : > { %2378 = dma.done.wait (%p2595_p12), %s492_s10, 128  }
  0x39   : > { %2380 = vsyncadd (%p2595_p12), %s492_s10, 4294967168 }
  0x3a   : > { %2382 = dma.done.wait (%p78_p1), [#allocation9], 1024  }
  0x3b   : > { %2384 = vsyncadd (%p78_p1), [#allocation9], 4294966272 }
  0x3c   : > { %2386 = dma.done.wait (%p78_p1), [#allocation12], 640  }
  0x3d   : > { %2388 = vsyncadd (%p78_p1), [#allocation12], 4294966656 }
  0x3e   : > { %2390 = dma.done.wait (%p78_p1), [#allocation15], 128  }
  0x3f   : > { %2392 = vsyncadd (%p78_p1), [#allocation15], 4294967168  ;;  %vm577_vm0 = vcmask 261120   ;;  %v586_v0 = vld [vmem:[#allocation8 + $0x18] sm:$0xff]  ;;  %v585_v1 = vld [vmem:[#allocation8 + $0x10] sm:$0xff]  ;;  %v2432_v55 = vmov 0.0  }
  0x40   : > { %v584_v2 = vld [vmem:[#allocation8 + $0x8] sm:$0xff]  ;;  %v2646_v3 = vand.u32 4294901760, %v586_v0  ;;  %v2648_v4 = vand.u32 4294901760, %v585_v1  ;;  %v583_v6 = vld [vmem:[#allocation8] sm:$0xff]  ;;  %v581_v7 = vld [vmem:[%s495_s14] sm:$0xff]  ;;  %578 = vst.msk [vmem:[#allocation2] sm:$0xff] %vm577_vm0, %v2432_v55 }
  0x41   : > { %v2650_v5 = vand.u32 4294901760, %v584_v2  ;;  %v782_v8 = vld [vmem:[#allocation10 + $0x18] sm:$0xff]  ;;  %v2652_v9 = vand.u32 4294901760, %v583_v6  ;;  %v589_v10 = vsel %vm577_vm0, %v581_v7, 0  ;;  %v781_v12 = vld [vmem:[#allocation10 + $0x10] sm:$0xff]  ;;  %v780_v13 = vld [vmem:[#allocation10 + $0x8] sm:$0xff] }
  0x42   : > { %v2655_v11 = vand.u32 4294901760, %v782_v8  ;;  %604 = vmatpush.msra.mxu0 %v2646_v3  ;;  %v633_v14 = vsub.f32 %v586_v0, %v2646_v3  ;;  %704 = vmatpush.msra.mxu3 %v2646_v3  ;;  %v639_v15 = vsub.f32 %v585_v1, %v2648_v4  ;;  %v2662_v17 = vand.u32 4294901760, %v589_v10  ;;  %v779_v37 = vld [vmem:[#allocation10] sm:$0xff]  ;;  %579 = vst.msk [vmem:[#allocation3] sm:$0xff] %vm577_vm0, %v2432_v55  ;;  %s2433_s2 = smov 8   ;;  %s2434_s27 = smov 24  }
  0x43   : > { %v645_v16 = vsub.f32 %v584_v2, %v2650_v5  ;;  %v2665_v18 = vsub.f32 %v583_v6, %v2652_v9  ;;  %v2670_v20 = vand.u32 4294901760, %v781_v12  ;;  %v2672_v21 = vand.u32 4294901760, %v780_v13  ;;  %580 = vst.msk [vmem:[#allocation4] sm:$0xff] %vm577_vm0, %v2432_v55  ;;  %s2435_s30 = smov 32   ;;  %s2436_s25 = smov 16  }
  0x44   : > { %v2668_v19 = vsub.f32 %v782_v8, %v2655_v11  ;;  %675 = vmatpush.msra.mxu2 %v633_v14  ;;  %606 = vmatpush.msra.mxu0 %v2648_v4  ;;  %v634_v22 = vand.u32 4294901760, %v633_v14  ;;  %v640_v23 = vand.u32 4294901760, %v639_v15  ;;  %v2676_v24 = vsub.f32 %v589_v10, %v2662_v17  ;;  %v2736_v8 = vld [vmem:[#allocation13] sm:$0xff]  ;;  %s2437_s12 = smov 97   ;;  %s2438_s16 = smov 127  }
  0x45   : > { %v646_v25 = vand.u32 4294901760, %v645_v16  ;;  %706 = vmatpush.msra.mxu3 %v2648_v4  ;;  %v652_v27 = vand.u32 4294901760, %v2665_v18  ;;  %v2682_v28 = vsub.f32 %v781_v12, %v2670_v20  ;;  %v2685_v29 = vsub.f32 %v780_v13, %v2672_v21  ;;  %1185 = vrot.lane.b32.xlu2 %v2736_v8, %s2433_s2  ;;  %s2439_s14 = smov 112   ;;  %s2441_s11 = smov 104  }
  0x46   : > { %v826_v26 = vand.u32 4294901760, %v2668_v19  ;;  %678 = vmatpush.msra.mxu2 %v639_v15  ;;  %608 = vmatpush.msra.mxu0 %v2650_v5  ;;  %v635_v30 = vsub.f32 %v633_v14, %v634_v22  ;;  %v641_v31 = vsub.f32 %v639_v15, %v640_v23  ;;  %v2689_v32 = vand.u32 4294901760, %v2676_v24  ;;  %s2857_s28 = sshll.u32 %s2415_s20, 5  ;;  %s1638_s24 = scalar_lea.sflag [#allocation7], %s2626_s7 }
  0x47   : > { %v647_v33 = vsub.f32 %v645_v16, %v646_v25  ;;  %708 = vmatpush.msra.mxu3 %v2650_v5  ;;  %v832_v35 = vand.u32 4294901760, %v2682_v28  ;;  %v838_v36 = vand.u32 4294901760, %v2685_v29  ;;  %v653_v41 = vsub.f32 %v2665_v18, %v652_v27  ;;  %v582_v1 = vld [vmem:[#allocation2] sm:$0xff]  ;;  %s1660_s3 = scalar_lea.hbm %s3075_s9, %s2857_s28  ;;  %s2289_s20 = scalar_lea.hbm %s3075_s9, 64 }
  0x48   : > { %v827_v34 = vsub.f32 %v2668_v19, %v826_v26  ;;  %v636_v38 = vand.u32 4294901760, %v635_v30  ;;  %681 = vmatpush.msra.mxu2 %v645_v16  ;;  %610 = vmatpush.msra.mxu0 %v2652_v9  ;;  %v642_v39 = vand.u32 4294901760, %v641_v31  ;;  %v614_v40 = vsub.f32 %v2676_v24, %v2689_v32  ;;  %v2741_v16 = vld [vmem:[#allocation14] sm:$0xff] }
  0x49   : > { %710 = vmatpush.msra.mxu3 %v2652_v9  ;;  %v833_v43 = vsub.f32 %v2682_v28, %v832_v35  ;;  %v648_v45 = vand.u32 4294901760, %v647_v33  ;;  %v839_v46 = vsub.f32 %v2685_v29, %v838_v36  ;;  %v801_v47 = vand.u32 4294901760, %v779_v37  ;;  %v778_v15 = vld [vmem:[#allocation3] sm:$0xff] }
  0x4a   : > { %733 = vmatpush.msrb.mxu0 %v634_v22  ;;  %v828_v42 = vand.u32 4294901760, %v827_v34  ;;  %637 = vmatpush.msra.mxu1 %v636_v38  ;;  %v2702_v44 = vand.u32 4294901760, %v614_v40  ;;  %v654_v49 = vand.u32 4294901760, %v653_v41  ;;  %v972_v22 = vld [vmem:[#allocation11 + $0x8] sm:$0xff]  ;;  %vm1229_vm1 = vcmask 1047808  }
  0x4b   : > { %684 = vmatpush.msra.mxu2 %v2665_v18  ;;  %714 = vmatmul.f32.vlgmr.msra.gmra.mxu3 %v2689_v32  ;;  %v834_v48 = vand.u32 4294901760, %v833_v43  ;;  %v843_v50 = vsub.f32 %v779_v37, %v801_v47  ;;  %v840_v51 = vand.u32 4294901760, %v839_v46  ;;  %v974_v18 = vld [vmem:[#allocation11 + $0x18] sm:$0xff]  ;;  %vm1194_vm2 = vcmask 64512  }
  0x4c   : > { %687 = vmatmul.f32.vlgmr.msra.gmra.mxu2 %v2676_v24  ;;  %643 = vmatpush.msra.mxu1 %v642_v39  ;;  %vm1196_vm3 = vcmask 130048   ;;  %vm1198_vm4 = vcmask 195584   ;;  %vm1275_vm6 = vcmask 1047556  }
  0x4d   : > { %616 = vmatmul.f32.vlgmr.msra.gmra.mxu0 %v2702_v44  ;;  %796 = vmatpush.msrb.mxu2 %v2655_v11  ;;  %v844_v52 = vand.u32 4294901760, %v843_v50 }
  0x4e   : > { %829 = vmatpush.msrb.mxu3 %v828_v42  ;;  %649 = vmatpush.msra.mxu1 %v648_v45  ;;  %v2086_v45 = vld [vmem:[%s3071_s5] ss:$0 sm:$0xff] }
  0x4f   : > { %737 = vmatpush.msrb.mxu0 %v640_v23  ;;  %798 = vmatpush.msrb.mxu2 %v2670_v20  ;;  %v845_v53 = vsub.f32 %v843_v50, %v844_v52  ;;  %v971_v23 = vld [vmem:[#allocation11] sm:$0xff] }
  0x50   : > { %835 = vmatpush.msrb.mxu3 %v834_v48  ;;  %655 = vmatpush.msra.mxu1 %v654_v49 }
  0x51   : > { %741 = vmatpush.msrb.mxu0 %v646_v25  ;;  %657 = vmatmul.f32.vlgmr.msra.gmra.mxu1 %v2662_v17  ;;  %v846_v54 = vand.u32 4294901760, %v845_v53 }
  0x52   : > { %800 = vmatpush.msrb.mxu2 %v2672_v21  ;;  %764 = vmatpush.msrb.mxu1 %v2646_v3 }
  0x53   : > { %841 = vmatpush.msrb.mxu3 %v840_v51  ;;  %745 = vmatpush.msrb.mxu0 %v652_v27  ;;  %v991_v27 = vand.u32 4294901760, %v972_v22 }
  0x54   : > { %802 = vmatpush.msrb.mxu2 %v801_v47  ;;  %766 = vmatpush.msrb.mxu1 %v2648_v4 }
  0x55   : > { %847 = vmatpush.msrb.mxu3 %v846_v54  ;;  %747 = vmatmul.f32.vlgmr.msrb.gmra.mxu0 %v2662_v17  ;;  %v1029_v33 = vsub.f32 %v972_v22, %v991_v27 }
  0x56   : > { %808 = vmatmul.f32.vlgmr.msrb.gmra.mxu2 %v2702_v44  ;;  %768 = vmatpush.msrb.mxu1 %v2650_v5 }
  0x57   : > { %849 = vmatmul.f32.vlgmr.msrb.gmra.mxu3 %v2662_v17  ;;  %925 = vmatpush.msra.mxu2 %v826_v26  ;;  %v1030_v37 = vand.u32 4294901760, %v1029_v33 }
  0x58   : > { %867 = vmatpush.msra.mxu0 %v2668_v19  ;;  %770 = vmatpush.msrb.mxu1 %v2652_v9 }
  0x59   : > { %956 = vmatpush.msra.mxu3 %v2655_v11  ;;  %929 = vmatpush.msra.mxu2 %v832_v35  ;;  %v1031_v41 = vsub.f32 %v1029_v33, %v1030_v37 }
  0x5a   : > { %870 = vmatpush.msra.mxu0 %v2682_v28  ;;  %772 = vmatmul.f32.vlgmr.msrb.gmra.mxu1 %v2662_v17  ;;  %v993_v28 = vand.u32 4294901760, %v971_v23 }
  0x5b   : > { %958 = vmatpush.msra.mxu3 %v2670_v20  ;;  %896 = vmatpush.msra.mxu1 %v2655_v11 }
  0x5c   : > { %933 = vmatpush.msra.mxu2 %v838_v36  ;;  %873 = vmatpush.msra.mxu0 %v2685_v29  ;;  %v1035_v34 = vsub.f32 %v971_v23, %v993_v28 }
  0x5d   : > { %960 = vmatpush.msra.mxu3 %v2672_v21  ;;  %898 = vmatpush.msra.mxu1 %v2670_v20  ;;  %v987_v20 = vand.u32 4294901760, %v974_v18 }
  0x5e   : > { %937 = vmatpush.msra.mxu2 %v844_v52  ;;  %876 = vmatpush.msra.mxu0 %v843_v50  ;;  %v1036_v38 = vand.u32 4294901760, %v1035_v34 }
  0x5f   : > { %939 = vmatmul.f32.vlgmr.msra.gmra.mxu2 %v2662_v17  ;;  %879 = vmatmul.f32.vlgmr.msra.gmra.mxu0 %v2676_v24  ;;  %v1017_v29 = vsub.f32 %v974_v18, %v987_v20 }
  0x60   : > { %900 = vmatpush.msra.mxu1 %v2672_v21  ;;  %962 = vmatpush.msra.mxu3 %v801_v47  ;;  %v973_v21 = vld [vmem:[#allocation11 + $0x10] sm:$0xff]  ;;  %v1037_v43 = vsub.f32 %v1035_v34, %v1036_v38 }
  0x61   : > { %964 = vmatmul.f32.vlgmr.msra.gmra.mxu3 %v2662_v17  ;;  %1202 = vrot.lane.b32.xlu2 %v2741_v16, %s2433_s2  ;;  %v989_v26 = vand.u32 4294901760, %v973_v21  ;;  %v1018_v35 = vand.u32 4294901760, %v1017_v29 }
  0x62   : > { %902 = vmatpush.msra.mxu1 %v801_v47  ;;  %988 = vmatpush.msrb.mxu0 %v987_v20  ;;  %v1032_v47 = vand.u32 4294901760, %v1031_v41  ;;  %v1038_v49 = vand.u32 4294901760, %v1037_v43  ;;  %v2442_v43 = vmov 1983009808  }
  0x63   : > { %906 = vmatmul.f32.vlgmr.msra.gmra.mxu1 %v2689_v32  ;;  %1088 = vmatpush.msrb.mxu3 %v987_v20  ;;  %v1023_v31 = vsub.f32 %v973_v21, %v989_v26  ;;  %v1019_v39 = vsub.f32 %v1017_v29, %v1018_v35 }
  0x64   : > { %1059 = vmatpush.msrb.mxu2 %v1017_v29  ;;  %990 = vmatpush.msrb.mxu0 %v989_v26 }
  0x65   : > { %1090 = vmatpush.msrb.mxu3 %v989_v26  ;;  %v1024_v36 = vand.u32 4294901760, %v1023_v31  ;;  %v1020_v42 = vand.u32 4294901760, %v1019_v39 }
  0x66   : > { %1062 = vmatpush.msrb.mxu2 %v1023_v31  ;;  %992 = vmatpush.msrb.mxu0 %v991_v27 }
  0x67   : > { %v1025_v40 = vsub.f32 %v1023_v31, %v1024_v36  ;;  %1092 = vmatpush.msrb.mxu3 %v991_v27  ;;  %1021 = vmatpush.msrb.mxu1 %v1020_v42 }
  0x68   : > { %1065 = vmatpush.msrb.mxu2 %v1029_v33  ;;  %994 = vmatpush.msrb.mxu0 %v993_v28 }
  0x69   : > { %1191 = vrot.lane.b32.xlu2 %v2736_v8, %s2434_s27  ;;  %v1026_v46 = vand.u32 4294901760, %v1025_v40  ;;  %1094 = vmatpush.msrb.mxu3 %v993_v28 }
  0x6a   : > { %1068 = vmatpush.msrb.mxu2 %v1035_v34  ;;  %1000 = vmatmul.f32.vlgmr.msrb.gmra.mxu0 %v2702_v44 }
  0x6b   : > { %1071 = vmatmul.f32.vlgmr.msrb.gmra.mxu2 %v2676_v24  ;;  %1027 = vmatpush.msrb.mxu1 %v1026_v46  ;;  %v2087_v24 = vld [vmem:[%s3070_s4] ss:$0 sm:$0xff] }
  0x6c   : > { %1098 = vmatmul.f32.vlgmr.msrb.gmra.mxu3 %v2689_v32  ;;  %1117 = vmatpush.msra.mxu0 %v1018_v35 }
  0x6d   : > { %1033 = vmatpush.msrb.mxu1 %v1032_v47 }
  0x6e   : > { %1121 = vmatpush.msra.mxu0 %v1024_v36 }
  0x6f   : > { %1039 = vmatpush.msrb.mxu1 %v1038_v49 }
  0x70   : > { %1041 = vmatmul.f32.vlgmr.msrb.gmra.mxu1 %v2662_v17  ;;  %1125 = vmatpush.msra.mxu0 %v1030_v37 }
  0x71   : > { %1148 = vmatpush.msra.mxu1 %v987_v20 }
  0x72   : > { %1129 = vmatpush.msra.mxu0 %v1036_v38 }
  0x73   : > { %1150 = vmatpush.msra.mxu1 %v989_v26  ;;  %1131 = vmatmul.f32.vlgmr.msra.gmra.mxu0 %v2662_v17 }
  0x75   : > { %1152 = vmatpush.msra.mxu1 %v991_v27 }
  0x77   : > { %1154 = vmatpush.msra.mxu1 %v993_v28 }
  0x78   : > { %1156 = vmatmul.f32.vlgmr.msra.gmra.mxu1 %v2662_v17 }
  0xca   : > { %v617_v56 = vpop.f32.mrf.mxu0 }
  0xce   : > { %v658_v57 = vpop.f32.mrf.mxu1  ;;  %v715_v60 = vpop.f32.mrf.mxu3 }
  0xcf   : > { %v688_v58 = vpop.f32.mrf.mxu2  ;;  %v659_v59 = vadd.f32 %v658_v57, %v617_v56 }
  0xd1   : > { %v689_v61 = vadd.f32 %v688_v58, %v659_v59 }
  0xd2   : > { %v748_v62 = vpop.f32.mrf.mxu0 }
  0xd3   : > { %v716_v63 = vadd.f32 %v715_v60, %v689_v61 }
  0xd5   : > { %v749_v0 = vadd.f32 %v748_v62, %v716_v63  ;;  %v970_v63 = vld [vmem:[#allocation4] sm:$0xff] }
  0xd7   : > { %v773_v2 = vpop.f32.mrf.mxu1 }
  0xd8   : > { %v774_v3 = vadd.f32 %v773_v2, %v749_v0 }
  0xd9   : > { %v809_v4 = vpop.f32.mrf.mxu2 }
  0xda   : > { %v850_v5 = vpop.f32.mrf.mxu3  ;;  %v776_v6 = vadd.f32 %v774_v3, %v582_v1 }
  0xdb   : > { %v851_v7 = vadd.f32 %v850_v5, %v809_v4 }
  0xdc   : > { %777 = vst.msk [vmem:[#allocation2] sm:$0xff] %vm577_vm0, %v776_v6  ;;  %v880_v9 = vpop.f32.mrf.mxu0 }
  0xdd   : > { %v881_v10 = vadd.f32 %v880_v9, %v851_v7  ;;  %v2088_v7 = vld [vmem:[%s3072_s6] ss:$0 sm:$0xff] }
  0xe0   : > { %v907_v11 = vpop.f32.mrf.mxu1 }
  0xe1   : > { %v908_v12 = vadd.f32 %v907_v11, %v881_v10  ;;  %v1186_v11 = vpop.permute.xlu2 %1185 }
  0xe2   : > { %v940_v13 = vpop.f32.mrf.mxu2  ;;  %v1195_v20 = vsel %vm1194_vm2, %v2736_v8, %v1186_v11 }
  0xe3   : > { %v941_v14 = vadd.f32 %v940_v13, %v908_v12  ;;  %v1165_v44 = vld [vmem:[#allocation2] sm:$0xff]  ;;  %v1214_v13 = vlaneseq }
  0xe4   : > { %v965_v19 = vpop.f32.mrf.mxu3  ;;  %v2762_v32 = vadd.f32 %v2087_v24, %v1165_v44 }
  0xe5   : > { %v966_v25 = vadd.f32 %v965_v19, %v941_v14  ;;  %v1215_v18 = vand.u32 127, %v1214_v13 }
  0xe7   : > { %v968_v30 = vadd.f32 %v966_v25, %v778_v15  ;;  %v1001_v55 = vpop.f32.mrf.mxu0  ;;  %v1220_v21 = vand.u32 1, %v1215_v18 }
  0xe9   : > { %969 = vst.msk [vmem:[#allocation3] sm:$0xff] %vm577_vm0, %v968_v30  ;;  %v1203_v12 = vpop.permute.xlu2 %1202  ;;  %vm1228_vm5 = vcmp.eq.s32.totalorder %v1220_v21, 0 }
  0xea   : > { %v1211_v22 = vsel %vm1194_vm2, %v2741_v16, %v1203_v12 }
  0xed   : > { %v1042_v17 = vpop.f32.mrf.mxu1 }
  0xee   : > { %v1043_v56 = vadd.f32 %v1042_v17, %v1001_v55  ;;  %v1072_v57 = vpop.f32.mrf.mxu2 }
  0xef   : > { %v1099_v59 = vpop.f32.mrf.mxu3 }
  0xf0   : > { %v1171_v48 = vld [vmem:[#allocation3] sm:$0xff]  ;;  %v1073_v58 = vadd.f32 %v1072_v57, %v1043_v56  ;;  %v1132_v61 = vpop.f32.mrf.mxu0 }
  0xf1   : > { %v2754_v50 = vadd.f32 %v2086_v45, %v1171_v48  ;;  %v1192_v19 = vpop.permute.xlu2 %1191  ;;  %v1280_v45 = vunpack.c.l.s4 %v2442_v43 }
  0xf2   : > { %v1100_v60 = vadd.f32 %v1099_v59, %v1073_v58 }
  0xf3   : > { %1247 = vrot.lane.b32.xlu0 %v2754_v50, %s2435_s30  ;;  %v2798_v48 = vunpack.c.0.s8 %v1280_v45 }
  0xf4   : > { %v1133_v62 = vadd.f32 %v1132_v61, %v1100_v60 }
  0xf5   : > { %v1157_v0 = vpop.f32.mrf.mxu1 }
  0xf6   : > { %v1158_v1 = vadd.f32 %v1157_v0, %v1133_v62 }
  0xf8   : > { %v1160_v2 = vadd.f32 %v1158_v1, %v970_v63 }
  0xfa   : > { %1161 = vst.msk [vmem:[#allocation4] sm:$0xff] %vm577_vm0, %v1160_v2 }
  0xfb   : > { %1230 = vrot.lane.b32.xlu0 %v2762_v32, %s2435_s30 }
 0x101   : > { %v1177_v9 = vld [vmem:[#allocation4] sm:$0xff] }
 0x102   : > { %v2782_v10 = vadd.f32 %v2088_v7, %v1177_v9 }
 0x103   : > { %1188 = vrot.lane.b32.xlu0 %v2736_v8, %s2436_s25 }
 0x104   : > { %v1525_v49 = vrot.slane %v2782_v10, 4 }
 0x10b   : > { %1208 = vrot.lane.b32.xlu0 %v2741_v16, %s2434_s27  ;;  %s2440_s27 = smov 120  }
 0x165   : > { %v1248_v51 = vpop.permute.xlu0 %1247 }
 0x166   : > { %v1249_v52 = vsel %vm1229_vm1, %v1248_v51, %v2754_v50 }
 0x167   : > { %1250 = vrot.lane.b32.xlu1 %v1249_v52, %s2435_s30  ;;  %v2443_v52 = vmov 1934713408  }
 0x16d   : > { %v1231_v53 = vpop.permute.xlu0 %1230 }
 0x16e   : > { %v1232_v54 = vsel %vm1229_vm1, %v1231_v53, %v2762_v32  ;;  %v1304_v53 = vunpack.c.l.s4 %v2443_v52 }
 0x16f   : > { %1233 = vrot.lane.b32.xlu1 %v1232_v54, %s2435_s30  ;;  %s2863_s30 = sshll.u32 %s2626_s7, 5 }
 0x175   : > { %v1189_v14 = vpop.permute.xlu0 %1188 }
 0x176   : > { %v1197_v23 = vsel %vm1196_vm3, %v1195_v20, %v1189_v14 }
 0x177   : > { %1205 = vrot.lane.b32.xlu1 %v2741_v16, %s2436_s25  ;;  %v1199_v27 = vsel %vm1198_vm4, %v1197_v23, %v1192_v19  ;;  %s555_s25 = scalar_lea.vmem [#allocation16], %s2863_s30 }
 0x178   : > { %v1253_v33 = vmul.f32 %v1199_v27, %v2754_v50  ;;  %v1236_v16 = vmul.f32 %v1199_v27, %v2762_v32 }
 0x17d   : > { %v1209_v26 = vpop.permute.xlu0 %1208 }
 0x1d9   : > { %v1251_v3 = vpop.permute.xlu1 %1250 }
 0x1da   : > { %v1252_v4 = vsel %vm1229_vm1, %v1251_v3, %v2754_v50 }
 0x1db   : > { %1258 = vrot.lane.b32.xlu2 %v1252_v4, %s2437_s12  ;;  %1255 = vrot.lane.b32.xlu1 %v1252_v4, %s2438_s16  ;;  %v2815_v4 = vunpack.c.0.s8 %v1304_v53 }
 0x1e1   : > { %v1234_v5 = vpop.permute.xlu1 %1233 }
 0x1e2   : > { %v1235_v6 = vsel %vm1229_vm1, %v1234_v5, %v2762_v32 }
 0x1e3   : > { %1241 = vrot.lane.b32.xlu1 %v1235_v6, %s2437_s12  ;;  %1238 = vrot.lane.b32.xlu0 %v1235_v6, %s2438_s16  ;;  %s1661_s12 = sshll.u32 %s555_s25, 4  ;;  %s2882_s16 = sshll.u32 %s1660_s3, 4  ;;  %s2895_s12 = int_to_ptr.vmem [resolvable:$true] %s1661_s12  ;;  %s1664_s16 = int_to_ptr.hbm [resolvable:$true] %s2882_s16 }
 0x1e4   : > { %s2283_s10 = sshra.s32 %s1664_s16, 4  ;;  %s2284_s10 = int_to_ptr.hbm [resolvable:$true] %s2283_s10 }
 0x1e5   : > { %p2290_p10 = scmp.lt.s32.totalorder %s2284_s10, %s3075_s9 }
 0x1e9   : > { %v1206_v15 = vpop.permute.xlu1 %1205 }
 0x1ea   : > { %v1212_v25 = vsel %vm1196_vm3, %v1211_v22, %v1206_v15 }
 0x1eb   : > { %1517 = vrot.lane.b32.xlu1 %v2782_v10, %s2439_s14  ;;  %v1213_v30 = vsel %vm1198_vm4, %v1212_v25, %v1209_v26 }
 0x235   : > { %v1259_v28 = vpop.permute.xlu2 %1258 }
 0x24d   : > { %v1256_v29 = vpop.permute.xlu1 %1255 }
 0x24e   : > { %v1261_v31 = vsel %vm1228_vm5, %v1256_v29, %v1259_v28 }
 0x24f   : > { %v1262_v34 = vmul.f32 %v1261_v31, %v1213_v30 }
 0x251   : > { %v1263_v35 = vadd.f32 %v1262_v34, %v1253_v33 }
 0x253   : > { %1393 = vrot.lane.b32.xlu2 %v1263_v35, %s2439_s14  ;;  %v1401_v32 = vrot.slane %v1263_v35, 4 }
 0x255   : > { %v1242_v8 = vpop.permute.xlu1 %1241  ;;  %v1239_v36 = vpop.permute.xlu0 %1238 }
 0x256   : > { %v1244_v37 = vsel %vm1228_vm5, %v1239_v36, %v1242_v8 }
 0x257   : > { %v1245_v38 = vmul.f32 %v1244_v37, %v1213_v30 }
 0x259   : > { %v1246_v39 = vadd.f32 %v1245_v38, %v1236_v16 }
 0x25b   : > { %1390 = vrot.lane.b32.xlu2 %v1263_v35, %s2440_s27  ;;  %1265 = vrot.lane.b32.xlu1 %v1246_v39, %s2440_s27  ;;  %v1277_v54 = vrot.slane %v1246_v39, 4 }
 0x25c   : > { %1268 = vrot.lane.b32.xlu0 %v1246_v39, %s2439_s14  ;;  %s2285_s14 = scalar_lea.hbm %s2284_s10, 32 }
 0x25d   : > { %v1518_v42 = vpop.permute.xlu1 %1517  ;;  %p2286_p1 = scmp.ne.s32.totalorder %s2284_s10, %s2285_s14  ;;  %p2291_p11 = scmp.lt.s32.totalorder %s2289_s20, %s2285_s14 }
 0x25e   : > { %v1523_v46 = vrot.slane %v1518_v42, 4  ;;  %v1526_v17 = vsel %vm1275_vm6, %v1518_v42, %v1525_v49 }
 0x25f   : > { %p2287_p3 = pnand %p2286_p1, %p2604_p4  ;;  %p2292_p12 = por %p2291_p11, %p2290_p10 }
 0x260   : > { %v1524_v44 = vsel %vm1275_vm6, %v1523_v46, %v2782_v10 }
 0x261   : > { %v2809_v62 = vperm.slane %v1524_v44, %v2798_v48  ;;  %p2288_p9 = pneg %p2287_p3 }
 0x263   : > { %1271 = vrot.lane.b32.xlu2 %v1246_v39, %s2441_s11  ;;  %1520 = vrot.lane.b32.xlu1 %v2782_v10, %s2441_s11  ;;  %v1549_v18 = vrot.slane %v2809_v62, 4  ;;  %p2293_p13 = pnand %p2292_p12, %p2288_p9 }
 0x264   : > { %1396 = vrot.lane.b32.xlu0 %v1263_v35, %s2441_s11 }
 0x26c   : > { %1514 = vrot.lane.b32.xlu0 %v2782_v10, %s2440_s27  ;;  %v2821_v10 = vperm.slane %v1526_v17, %v2798_v48 }
 0x2ad   : > { %v1394_v40 = vpop.permute.xlu2 %1393 }
 0x2ae   : > { %v1399_v50 = vrot.slane %v1394_v40, 4  ;;  %v1402_v58 = vsel %vm1275_vm6, %v1394_v40, %v1401_v32 }
 0x2af   : > { %v1410_v6 = vperm.slane %v1402_v58, %v2798_v48 }
 0x2b0   : > { %v1400_v63 = vsel %vm1275_vm6, %v1399_v50, %v1263_v35 }
 0x2b1   : > { %v1406_v12 = vperm.slane %v1400_v63, %v2798_v48  ;;  %v1437_v23 = vrot.slane %v1410_v6, 4 }
 0x2b3   : > { %v1425_v34 = vrot.slane %v1406_v12, 4 }
 0x2b5   : > { %v2796_v41 = vpop.permute.xlu2 %1390 }
 0x2b6   : > { %v1413_v25 = vrot.slane %v2796_v41, 4 }
 0x2bd   : > { %v1272_v47 = vpop.permute.xlu2 %1271 }
 0x2be   : > { %v1287_v24 = vrot.slane %v1272_v47, 4 }
 0x2cd   : > { %v1266_v51 = vpop.permute.xlu1 %1265 }
 0x2ce   : > { %v1288_v55 = vsel %vm1275_vm6, %v1287_v24, %v1266_v51  ;;  %v1289_v56 = vrot.slane %v1266_v51, 4  ;;  %v1269_v57 = vpop.permute.xlu0 %1268 }
 0x2cf   : > { %v1294_v59 = vperm.slane %v1288_v55, %v2798_v48  ;;  %v1274_v60 = vrot.slane %v1269_v57, 4  ;;  %v1278_v61 = vsel %vm1275_vm6, %v1269_v57, %v1277_v54 }
 0x2d0   : > { %v1290_v0 = vsel %vm1275_vm6, %v1272_v47, %v1289_v56  ;;  %v1286_v1 = vperm.slane %v1278_v61, %v2798_v48 }
 0x2d1   : > { %v1298_v2 = vperm.slane %v1290_v0, %v2798_v48  ;;  %v1299_v3 = vrot.slane %v1294_v59, 4  ;;  %v1276_v5 = vsel %vm1275_vm6, %v1274_v60, %v1246_v39 }
 0x2d2   : > { %v1282_v7 = vperm.slane %v1276_v5, %v2798_v48  ;;  %v1313_v9 = vrot.slane %v1286_v1, 4 }
 0x2d3   : > { %v1311_v11 = vrot.slane %v1298_v2, 4 }
 0x2d4   : > { %v1300_v13 = vsel %vm1275_vm6, %v1299_v3, %v1282_v7  ;;  %v1301_v14 = vrot.slane %v1282_v7, 4  ;;  %v1314_v15 = vsel %vm1275_vm6, %v1298_v2, %v1313_v9 }
 0x2d5   : > { %v1306_v19 = vperm.slane %v1300_v13, %v2815_v4  ;;  %v1312_v20 = vsel %vm1275_vm6, %v1311_v11, %v1286_v1  ;;  %v1322_v21 = vperm.slane %v1314_v15, %v2815_v4  ;;  %v2830_v22 = vpop.permute.xlu1 %1520 }
 0x2d6   : > { %v1302_v26 = vsel %vm1275_vm6, %v1294_v59, %v1301_v14  ;;  %v1318_v27 = vperm.slane %v1312_v20, %v2815_v4  ;;  %v1397_v28 = vpop.permute.xlu0 %1396  ;;  %v1535_v8 = vrot.slane %v2830_v22, 4 }
 0x2d7   : > { %v1310_v29 = vperm.slane %v1302_v26, %v2815_v4  ;;  %v1323_v30 = vrot.slane %v1306_v19, 4  ;;  %v1329_v31 = vrot.slane %v1322_v21, 4  ;;  %v1411_v33 = vrot.slane %v1397_v28, 4 }
 0x2d8   : > { %v1327_v35 = vrot.slane %v1318_v27, 4  ;;  %v1414_v36 = vsel %vm1275_vm6, %v1397_v28, %v1413_v25 }
 0x2d9   : > { %v1324_v37 = vsel %vm1275_vm6, 0.0, %v1323_v30  ;;  %v1325_v16 = vrot.slane %v1310_v29, 4  ;;  %v1330_v38 = vsel %vm1275_vm6, 0.0, %v1329_v31  ;;  %v1342_v39 = vsel %vm1275_vm6, %v1329_v31, %v1318_v27 }
 0x2da   : > { %v1328_v40 = vsel %vm1275_vm6, 0.0, %v1327_v35  ;;  %v1346_v42 = vperm.slane %v1342_v39, %v2798_v48  ;;  %v1347_v43 = vrot.slane %v1330_v38, 4  ;;  %v1412_v45 = vsel %vm1275_vm6, %v1411_v33, %v2796_v41 }
 0x2db   : > { %v1326_v46 = vsel %vm1275_vm6, 0.0, %v1325_v16  ;;  %v1331_v47 = vsel %vm1275_vm6, %v1325_v16, %v1306_v19  ;;  %v1418_v49 = vperm.slane %v1412_v45, %v2798_v48  ;;  %v1422_v50 = vperm.slane %v1414_v36, %v2798_v48 }
 0x2dc   : > { %v1335_v24 = vperm.slane %v1331_v47, %v2798_v48  ;;  %v1336_v44 = vrot.slane %v1326_v46, 4  ;;  %v1348_v32 = vsel %vm1275_vm6, %v1347_v43, %v1328_v40  ;;  %v1367_v51 = vrot.slane %v1346_v42, 4 }
 0x2dd   : > { %v1352_v52 = vperm.slane %v1348_v32, %v2798_v48  ;;  %v1423_v53 = vrot.slane %v1418_v49, 4  ;;  %v1426_v41 = vsel %vm1275_vm6, %v1418_v49, %v1425_v34  ;;  %v1435_v54 = vrot.slane %v1422_v50, 4 }
 0x2de   : > { %v1337_v17 = vsel %vm1275_vm6, %v1336_v44, %v1324_v37  ;;  %v1355_v55 = vrot.slane %v1335_v24, 4  ;;  %v1434_v56 = vperm.slane %v1426_v41, %v2815_v4  ;;  %v1438_v57 = vsel %vm1275_vm6, %v1422_v50, %v1437_v23  ;;  %v1515_v31 = vpop.permute.xlu0 %1514 }
 0x2df   : > { %v1341_v58 = vperm.slane %v1337_v17, %v2798_v48  ;;  %v1365_v59 = vrot.slane %v1352_v52, 4  ;;  %v1368_v60 = vsel %vm1275_vm6, %v1352_v52, %v1367_v51  ;;  %v1424_v61 = vsel %vm1275_vm6, %v1423_v53, %v1406_v12 }
 0x2e0   : > { %v1376_v63 = vperm.slane %v1368_v60, %v2815_v4  ;;  %v1430_v0 = vperm.slane %v1424_v61, %v2815_v4  ;;  %v1436_v1 = vsel %vm1275_vm6, %v1435_v54, %v1410_v6  ;;  %v1446_v2 = vperm.slane %v1438_v57, %v2815_v4 }
 0x2e1   : > { %v1353_v3 = vrot.slane %v1341_v58, 4  ;;  %v1356_v5 = vsel %vm1275_vm6, %v1341_v58, %v1355_v55  ;;  %v1366_v7 = vsel %vm1275_vm6, %v1365_v59, %v1346_v42  ;;  %v1442_v9 = vperm.slane %v1436_v1, %v2815_v4 }
 0x2e2   : > { %v1364_v11 = vperm.slane %v1356_v5, %v2815_v4  ;;  %v1372_v12 = vperm.slane %v1366_v7, %v2815_v4  ;;  %v1381_v13 = vrot.slane %v1376_v63, 4  ;;  %v1447_v6 = vrot.slane %v1430_v0, 4 }
 0x2e3   : > { %v1354_v14 = vsel %vm1275_vm6, %v1353_v3, %v1335_v24  ;;  %v1449_v15 = vrot.slane %v1434_v56, 4  ;;  %v1451_v19 = vrot.slane %v1442_v9, 4  ;;  %v1453_v20 = vrot.slane %v1446_v2, 4 }
 0x2e4   : > { %v1360_v21 = vperm.slane %v1354_v14, %v2815_v4  ;;  %v1377_v23 = vrot.slane %v1372_v12, 4  ;;  %v1382_v25 = vsel %vm1275_vm6, %v1381_v13, %v1364_v11  ;;  %v1383_v26 = vrot.slane %v1364_v11, 4 }
 0x2e5   : > { %v1448_v27 = vsel %vm1275_vm6, 0.0, %v1447_v6  ;;  %v1450_v28 = vsel %vm1275_vm6, 0.0, %v1449_v15  ;;  %v1452_v29 = vsel %vm1275_vm6, 0.0, %v1451_v19  ;;  %v1454_v30 = vsel %vm1275_vm6, 0.0, %v1453_v20  ;;  %1387 = vst.msk [vmem:[%s555_s25 + $0x10] sm:$0xff] %vm1194_vm2, %v1382_v25 }
 0x2e6   : > { %v1378_v33 = vsel %vm1275_vm6, %v1377_v23, %v1360_v21  ;;  %v1379_v34 = vrot.slane %v1360_v21, 4  ;;  %v1384_v35 = vsel %vm1275_vm6, %v1376_v63, %v1383_v26  ;;  %v1455_v36 = vsel %vm1275_vm6, %v1449_v15, %v1430_v0 }
 0x2e7   : > { %v1459_v37 = vperm.slane %v1455_v36, %v2798_v48  ;;  %v1460_v16 = vrot.slane %v1450_v28, 4  ;;  %v1466_v38 = vsel %vm1275_vm6, %v1453_v20, %v1442_v9  ;;  %v1471_v39 = vrot.slane %v1454_v30, 4  ;;  %1385 = vst.msk [vmem:[%s555_s25] sm:$0xff] %vm1194_vm2, %v1378_v33 }
 0x2e8   : > { %v1380_v40 = vsel %vm1275_vm6, %v1372_v12, %v1379_v34  ;;  %v1470_v42 = vperm.slane %v1466_v38, %v2798_v48  ;;  %v1536_v43 = vsel %vm1275_vm6, %v1535_v8, %v1515_v31  ;;  %v1537_v45 = vrot.slane %v1515_v31, 4  ;;  %1388 = vst.msk [vmem:[%s555_s25 + $0x18] sm:$0xff] %vm1194_vm2, %v1384_v35 }
 0x2e9   : > { %v1461_v46 = vsel %vm1275_vm6, %v1460_v16, %v1448_v27  ;;  %v1472_v47 = vsel %vm1275_vm6, %v1471_v39, %v1452_v29  ;;  %v1479_v49 = vrot.slane %v1459_v37, 4  ;;  %v1542_v50 = vperm.slane %v1536_v43, %v2798_v48  ;;  %1386 = vst.msk [vmem:[%s555_s25 + $0x8] sm:$0xff] %vm1194_vm2, %v1380_v40 }
 0x2ea   : > { %v1465_v24 = vperm.slane %v1461_v46, %v2798_v48  ;;  %v1476_v44 = vperm.slane %v1472_v47, %v2798_v48  ;;  %v1491_v32 = vrot.slane %v1470_v42, 4  ;;  %v1538_v8 = vsel %vm1275_vm6, %v2830_v22, %v1537_v45 }
 0x2eb   : > { %2296 = shalt.err (!%p2293_p13)
}
 0x2ec   : > { %s3081_s7 = smov 128   ;;  %v1561_v22 = vrot.slane %v2821_v10, 4  ;;  %v1546_v51 = vperm.slane %v1538_v8, %v2798_v48  ;;  %v1547_v52 = vrot.slane %v1542_v50, 4  ;;  %v1550_v53 = vsel %vm1275_vm6, %v1542_v50, %v1549_v18  ;;  %s1642_s10 = sand.u32 1, %s2536_s23  }
 0x2ed   : > { %1970 = dma.vmem_to_hbm [thread:$0]  (%p2604_p4), %s2895_s12, 512, %s1664_s16, %s1638_s24, %s3081_s7, %s3081_s7, %s2433_s2   ;;  %v1477_v41 = vrot.slane %v1465_v24, 4  ;;  %v1480_v54 = vsel %vm1275_vm6, %v1465_v24, %v1479_v49  ;;  %v1489_v17 = vrot.slane %v1476_v44, 4  ;;  %v1492_v55 = vsel %vm1275_vm6, %v1476_v44, %v1491_v32 }
 0x2ee   : > { %v1488_v56 = vperm.slane %v1480_v54, %v2815_v4  ;;  %v1500_v57 = vperm.slane %v1492_v55, %v2815_v4  ;;  %v1548_v58 = vsel %vm1275_vm6, %v1547_v52, %v2809_v62  ;;  %v1558_v59 = vperm.slane %v1550_v53, %v2815_v4  ;;  %s3099_s16 = sld [smem:[#allocation30_spill]]  ;;  %s562_s14 = scalar_lea.vmem [#allocation17], %s2863_s30 }
 0x2ef   : > { %v1478_v18 = vsel %vm1275_vm6, %v1477_v41, %v1459_v37  ;;  %v1490_v60 = vsel %vm1275_vm6, %v1489_v17, %v1470_v42  ;;  %v1554_v61 = vperm.slane %v1548_v58, %v2815_v4  ;;  %v1559_v63 = vrot.slane %v1546_v51, 4  ;;  %s1679_s27 = sshll.u32 %s562_s14, 4  ;;  %s2983_s20 = scalar_lea.sflag [#allocation18], %s1642_s10  ;;  %s2970_s27 = int_to_ptr.vmem [resolvable:$true] %s1679_s27 }
 0x2f0   : > { %v1484_v0 = vperm.slane %v1478_v18, %v2815_v4  ;;  %v1496_v1 = vperm.slane %v1490_v60, %v2815_v4  ;;  %v1505_v2 = vrot.slane %v1500_v57, 4  ;;  %v1507_v62 = vrot.slane %v1488_v56, 4 }
 0x2f1   : > { %v1560_v3 = vsel %vm1275_vm6, %v1559_v63, %v2821_v10  ;;  %v1562_v5 = vsel %vm1275_vm6, %v1546_v51, %v1561_v22  ;;  %v1571_v7 = vrot.slane %v1554_v61, 4  ;;  %v1573_v9 = vrot.slane %v1558_v59, 4 }
 0x2f2   : > { %v1501_v11 = vrot.slane %v1496_v1, 4  ;;  %v1503_v12 = vrot.slane %v1484_v0, 4  ;;  %v1506_v13 = vsel %vm1275_vm6, %v1505_v2, %v1488_v56  ;;  %v1508_v6 = vsel %vm1275_vm6, %v1500_v57, %v1507_v62 }
 0x2f3   : > { %v1566_v14 = vperm.slane %v1560_v3, %v2815_v4  ;;  %v1570_v15 = vperm.slane %v1562_v5, %v2815_v4  ;;  %v1572_v10 = vsel %vm1275_vm6, 0.0, %v1571_v7  ;;  %v1574_v19 = vsel %vm1275_vm6, 0.0, %v1573_v9  ;;  %1511 = vst.msk [vmem:[%s562_s14 + $0x10] sm:$0xff] %vm1194_vm2, %v1506_v13 }
 0x2f4   : > { %s1678_s24 = scalar_lea.hbm %s3099_s16, %s2857_s28  ;;  %v1502_v20 = vsel %vm1275_vm6, %v1501_v11, %v1484_v0  ;;  %v1504_v21 = vsel %vm1275_vm6, %v1496_v1, %v1503_v12  ;;  %v1579_v23 = vsel %vm1275_vm6, %v1573_v9, %v1554_v61  ;;  %v1584_v25 = vrot.slane %v1574_v19, 4  ;;  %1512 = vst.msk [vmem:[%s562_s14 + $0x18] sm:$0xff] %vm1194_vm2, %v1508_v6 }
 0x2f5   : > { %s2957_s11 = sshll.u32 %s1678_s24, 4  ;;  %v1575_v26 = vrot.slane %v1566_v14, 4  ;;  %v1577_v27 = vrot.slane %v1570_v15, 4  ;;  %v1583_v28 = vperm.slane %v1579_v23, %v2798_v48  ;;  %1509 = vst.msk [vmem:[%s562_s14] sm:$0xff] %vm1194_vm2, %v1502_v20  ;;  %s2317_s24 = scalar_lea.hbm %s3099_s16, 64  ;;  %s1682_s11 = int_to_ptr.hbm [resolvable:$true] %s2957_s11 }
 0x2f6   : > { %v1585_v29 = vsel %vm1275_vm6, %v1584_v25, %v1572_v10  ;;  %1510 = vst.msk [vmem:[%s562_s14 + $0x8] sm:$0xff] %vm1194_vm2, %v1504_v21  ;;  %s2311_s29 = sshra.s32 %s1682_s11, 4  ;;  %s2312_s29 = int_to_ptr.hbm [resolvable:$true] %s2311_s29 }
 0x2f7   : > { %v1576_v30 = vsel %vm1275_vm6, 0.0, %v1575_v26  ;;  %v1578_v31 = vsel %vm1275_vm6, 0.0, %v1577_v27  ;;  %v1589_v33 = vperm.slane %v1585_v29, %v2798_v48  ;;  %v1590_v34 = vsel %vm1275_vm6, %v1577_v27, %v1566_v14  ;;  %s2313_s3 = scalar_lea.hbm %s2312_s29, 32  ;;  %p2318_p8 = scmp.lt.s32.totalorder %s2312_s29, %s3099_s16 }
 0x2f8   : > { %p2314_p0 = scmp.ne.s32.totalorder %s2312_s29, %s2313_s3  ;;  %p2319_p1 = scmp.lt.s32.totalorder %s2317_s24, %s2313_s3 }
 0x2fa   : > { %p2315_p2 = pnand %p2314_p0, %p2604_p4  ;;  %p2320_p3 = por %p2319_p1, %p2318_p8 }
 0x2fc   : > { %p2316_p5 = pneg %p2315_p2 }
 0x2fe   : > { %p2321_p9 = pnand %p2320_p3, %p2316_p5 }
 0x300   : > { %2324 = shalt.err (!%p2321_p9)
}
 0x301   : > { %s3100_s23 = smov 128   ;;  %v1594_v35 = vperm.slane %v1590_v34, %v2798_v48  ;;  %v1595_v36 = vrot.slane %v1578_v31, 4  ;;  %v1603_v37 = vrot.slane %v1583_v28, 4  ;;  %v1601_v16 = vrot.slane %v1589_v33, 4  ;;  %s569_s3 = scalar_lea.vmem [#allocation19], %s2863_s30 }
 0x302   : > { %1971 = dma.vmem_to_hbm [thread:$0]  (%p2604_p4), %s2970_s27, 512, %s1682_s11, %s2983_s20, %s3100_s23, %s3100_s23, %s2433_s2  }
 0x303   : > { %v1596_v38 = vsel %vm1275_vm6, %v1595_v36, %v1576_v30  ;;  %v1604_v39 = vsel %vm1275_vm6, %v1589_v33, %v1603_v37  ;;  %v1615_v40 = vrot.slane %v1594_v35, 4  ;;  %v1602_v43 = vsel %vm1275_vm6, %v1601_v16, %v1583_v28  ;;  %s3101_s27 = sld [smem:[#allocation31_spill]]  ;;  %s1697_s25 = sshll.u32 %s569_s3, 4  ;;  %s1698_s25 = int_to_ptr.vmem [resolvable:$true] %s1697_s25 }
 0x304   : > { %v1600_v42 = vperm.slane %v1596_v38, %v2798_v48  ;;  %v1612_v45 = vperm.slane %v1604_v39, %v2815_v4  ;;  %v1608_v46 = vperm.slane %v1602_v43, %v2815_v4 }
 0x306   : > { %v1613_v47 = vrot.slane %v1600_v42, 4  ;;  %v1616_v49 = vsel %vm1275_vm6, %v1600_v42, %v1615_v40  ;;  %v1631_v50 = vrot.slane %v1612_v45, 4  ;;  %v1627_v44 = vrot.slane %v1608_v46, 4 }
 0x307   : > { %v1624_v24 = vperm.slane %v1616_v49, %v2815_v4 }
 0x308   : > { %v1614_v32 = vsel %vm1275_vm6, %v1613_v47, %v1594_v35 }
 0x309   : > { %s1696_s11 = scalar_lea.hbm %s3101_s27, %s2857_s28  ;;  %v1620_v48 = vperm.slane %v1614_v32, %v2815_v4  ;;  %v1629_v8 = vrot.slane %v1624_v24, 4  ;;  %v1632_v22 = vsel %vm1275_vm6, %v1624_v24, %v1631_v50  ;;  %s2345_s14 = scalar_lea.hbm %s3101_s27, 64 }
 0x30a   : > { %s3016_s29 = sshll.u32 %s1696_s11, 4  ;;  %1636 = vst.msk [vmem:[%s569_s3 + $0x18] sm:$0xff] %vm1194_vm2, %v1632_v22  ;;  %s1700_s29 = int_to_ptr.hbm [resolvable:$true] %s3016_s29 }
 0x30b   : > { %v1625_v51 = vrot.slane %v1620_v48, 4  ;;  %v1628_v52 = vsel %vm1275_vm6, %v1620_v48, %v1627_v44  ;;  %v1630_v53 = vsel %vm1275_vm6, %v1629_v8, %v1612_v45  ;;  %s2339_s28 = sshra.s32 %s1700_s29, 4  ;;  %s2340_s28 = int_to_ptr.hbm [resolvable:$true] %s2339_s28 }
 0x30c   : > { %1634 = vst.msk [vmem:[%s569_s3 + $0x8] sm:$0xff] %vm1194_vm2, %v1628_v52  ;;  %s2341_s30 = scalar_lea.hbm %s2340_s28, 32  ;;  %p2346_p13 = scmp.lt.s32.totalorder %s2340_s28, %s3101_s27 }
 0x30d   : > { %v1626_v4 = vsel %vm1275_vm6, %v1625_v51, %v1608_v46  ;;  %1635 = vst.msk [vmem:[%s569_s3 + $0x10] sm:$0xff] %vm1194_vm2, %v1630_v53  ;;  %p2342_p10 = scmp.ne.s32.totalorder %s2340_s28, %s2341_s30  ;;  %p2347_p0 = scmp.lt.s32.totalorder %s2345_s14, %s2341_s30 }
 0x30e   : > { %1633 = vst.msk [vmem:[%s569_s3] sm:$0xff] %vm1194_vm2, %v1626_v4 }
 0x30f   : > { %p2343_p11 = pnand %p2342_p10, %p2604_p4  ;;  %p2348_p2 = por %p2347_p0, %p2346_p13 }
 0x311   : > { %p2344_p12 = pneg %p2343_p11 }
 0x313   : > { %p2349_p5 = pnand %p2348_p2, %p2344_p12 }
 0x315   : > { %2352 = shalt.err (!%p2349_p5)
}
 0x316   : > { %1972 = dma.vmem_to_hbm [thread:$0]  (%p2604_p4), %s1698_s25, 512, %s1700_s29, %s2983_s20, %s3100_s23, %s3100_s23, %s2433_s2  }
 0x317 PF: > { %s1714_s11 = sand.u32 1, %s2403_s17   ;;  %p1997_p8 = pnand %p1921_p6, %p2612_p7 }
 0x318   : > { %s1715_s3 = scalar_lea.sflag [#allocation7], %s1714_s11 }
 0x319   : > { %p1998_p1 = pneg %p1997_p8 }
 0x31b   : > { %2394 = dma.done.wait (%p1998_p1), %s1715_s3, 512  }
 0x31c   : > { %2396 = vsyncadd (%p1998_p1), %s1715_s3, 4294966784  ;;  %s3102_s28 = sadd.s32 4294967294, %s2423_s22  }
 0x31d   : > { %s1724_s13 = sand.u32 1, %s3102_s28  }
 0x31e   : > { %s1725_s30 = scalar_lea.sflag [#allocation18], %s1724_s13 }
 0x31f   : > { %2398 = dma.done.wait (%p1998_p1), %s1725_s30, 1024  }
 0x320   : > { %2400 = vsyncadd (%p1998_p1), %s1725_s30, 4294966272  ;;  %s34_s22 = sadd.s32 1, %s2423_s22   ;;  %s3103_s17 = smov %s2407_s18 }
 0x321   : > { %p31_p4 = scmp.ge.s32.totalorder %s34_s22, 4   ;;  %s3104_s18 = smov %s2411_s19 }
 0x322   : > { %s3105_s19 = smov %s2610_s26  ;;  %s3106_s20 = smov %s2419_s21 }
 0x323   : > { %s3107_s21 = smov %s3109_s15  ;;  %33 = sbr.rel (!%p31_p4) target bundleno = 18 (0x12), region = 166 }
 0x328   :  { %1741 = vsyncpa [#allocation6], 1 }
 0x329   :  { %1743 = vsyncpa [#allocation6 + $0x1], 1 }
 0x32a   :  { %1744 = vsyncpa [#allocation9], 1 }
 0x32b   :  { %1745 = vsyncpa [#allocation12], 1 }
 0x32c   :  { %1746 = vsyncpa [#allocation15], 1 }
 0x32d   :  { %1747 = vsyncpa [#allocation7], 1 }
 0x32e   :  { %1749 = vsyncpa [#allocation7 + $0x1], 1 }
 0x32f   :  { %1750 = vsyncpa [#allocation18], 1 }
 0x330   :  { %1752 = vsyncpa [#allocation18 + $0x1], 1 }

</bundles_post_ra>
